<compile_context>
chip_gen: v7x
topology: tpu7x:2x2x1
jax: 0.10.0
libtpu: 0.0.40
codegen_flags: <defaults>
</compile_context>

<pallas_src>
import functools

import jax
import jax.numpy as jnp
from jax import lax
from jax.experimental import pallas as pl
from jax.experimental.pallas import tpu as pltpu

_NEG = -1e30


def _gat_kernel(adjb_ref, x_ref, w1_ref, a1d_ref, a1s_ref, b1_ref,
                w2_ref, a2d_ref, a2s_ref, b2_ref, o_ref,
                *, heads, hidden):
    adj_bias = adjb_ref[...]                  # [N, N] f32: 0 on edges, -1e30 off
    n = adj_bias.shape[0]
    lp = w1_ref.shape[1]                      # packed (heads*hidden) lane width

    def leaky_relu(v):
        # LeakyReLU(negative_slope=0.2) == max(v, 0.2*v)
        return jnp.maximum(v, 0.2 * v)

    def masked_exp(e):
        """Row-stable exp of edge scores; non-edges underflow to exact 0."""
        s = e + adj_bias
        m = jnp.max(s, axis=1, keepdims=True)
        p = jnp.exp(s - m)                    # exp(-1e30 - m) == 0 exactly
        denom = jnp.sum(p, axis=1, keepdims=True)   # >= exp(0): self-loops exist
        return p, denom

    # ---------------- layer 1: all heads packed along the lane dimension -----
    # z_all[:, h*hidden + d] == (x @ W1_h)[:, d]
    z_all = jnp.dot(x_ref[...], w1_ref[...],
                    preferred_element_type=jnp.float32)              # [N, LP]

    # Attention-score components for every head with two small MXU dots that
    # contract the lane dim of both operands (q @ k.T pattern, no z transpose).
    s_dst = lax.dot_general(z_all, a1d_ref[...], (((1,), (1,)), ((), ())),
                            preferred_element_type=jnp.float32)      # [N, 8]
    s_src = lax.dot_general(a1s_ref[...], z_all, (((1,), (1,)), ((), ())),
                            preferred_element_type=jnp.float32)      # [8, N]

    lane = lax.broadcasted_iota(jnp.int32, (1, lp), 1)
    h1 = None
    for h in range(heads):
        e = leaky_relu(s_dst[:, h:h + 1] + s_src[h:h + 1, :])        # [N, N]
        p, denom = masked_exp(e)
        agg = jnp.dot(p, z_all, preferred_element_type=jnp.float32)  # [N, LP]
        # Normalize after the matmul; keep only this head's lane block of the
        # packed layout.  approx=False: exact reciprocal of the [N,1] denom
        # (keeps the 1e-3 f32 tolerance; the [N,N] divide is gone either way).
        head_lanes = (lane >= h * hidden) & (lane < (h + 1) * hidden)
        scale = jnp.where(head_lanes, pl.reciprocal(denom, approx=False), 0.0)
        contrib = agg * scale
        h1 = contrib if h1 is None else h1 + contrib
    h1 = h1 + b1_ref[...]
    h1 = jnp.where(h1 > 0.0, h1, jnp.exp(h1) - 1.0)                  # ELU

    # ---------------- layer 2: single head, concat=False ---------------------
    # h1 is already the packed head-concat, so the feature transform is one dot.
    z2 = jnp.dot(h1, w2_ref[...], preferred_element_type=jnp.float32)  # [N, CP]
    s2_dst = lax.dot_general(z2, a2d_ref[...], (((1,), (1,)), ((), ())),
                             preferred_element_type=jnp.float32)     # [N, 8]
    s2_src = lax.dot_general(a2s_ref[...], z2, (((1,), (1,)), ((), ())),
                             preferred_element_type=jnp.float32)     # [8, N]
    e2 = leaky_relu(s2_dst[:, 0:1] + s2_src[0:1, :])
    p2, denom2 = masked_exp(e2)
    logits = (jnp.dot(p2, z2, preferred_element_type=jnp.float32)
              * pl.reciprocal(denom2, approx=False))
    # b2 carries -1e30 in the padded class lanes, so they drop out of the
    # log_softmax reductions below with no extra select.
    logits = logits + b2_ref[...]

    # ---------------- log_softmax over the class lanes ------------------------
    m = jnp.max(logits, axis=1, keepdims=True)
    shifted = logits - m
    lse = jnp.log(jnp.sum(jnp.exp(shifted), axis=1, keepdims=True))
    o_ref[...] = shifted - lse                # full-lane-width unmasked store


def _pad_to(x, shape):
    return jnp.pad(x, [(0, t - s) for s, t in zip(x.shape, shape)])


def gat_forward(adj_mask, x, w1, a1_src, a1_dst, b1, w2, a2_src, a2_dst, b2,
                *, heads, hidden, n_classes, lane=128):
    """Fused 2-layer GAT forward; heads packed along lanes, axes padded to 128."""
    n, f_in = x.shape
    hh = heads * hidden
    rup = lambda v: ((v + lane - 1) // lane) * lane
    fp, lp, cp = rup(f_in), rup(hh), rup(n_classes)

    # Additive attention mask precomputed once (0 on edges incl. self-loops,
    # -1e30 elsewhere) -> vadd in-kernel instead of per-softmax selects.
    adj_bias = jnp.where(adj_mask > 0.0, 0.0, _NEG).astype(jnp.float32)

    x_p = _pad_to(x.astype(jnp.float32), (n, fp))
    # conv1 weight [F_in, heads*hidden]: column h*hidden+d is head h, feature d
    # -> already the packed-lane layout; pad once to 128 lanes.
    w1_p = _pad_to(w1, (fp, lp))
    # Per-head attention vectors: one sublane per head (padded to 8 sublanes),
    # placed at that head's packed lane offsets.
    a1d_pk = jnp.zeros((8, lp), jnp.float32)
    a1s_pk = jnp.zeros((8, lp), jnp.float32)
    for h in range(heads):
        a1d_pk = a1d_pk.at[h, h * hidden:(h + 1) * hidden].set(a1_dst[h])
        a1s_pk = a1s_pk.at[h, h * hidden:(h + 1) * hidden].set(a1_src[h])
    b1_p = _pad_to(b1.reshape(1, hh), (1, lp))
    # conv2 weight [heads*hidden, C]: rows already match the packed h1 lanes.
    w2_p = _pad_to(w2, (lp, cp))
    a2d_pk = _pad_to(a2_dst.reshape(1, n_classes), (8, cp))
    a2s_pk = _pad_to(a2_src.reshape(1, n_classes), (8, cp))
    # Fold the class-lane mask for log_softmax into the conv2 bias padding.
    b2_p = jnp.full((1, cp), _NEG, jnp.float32).at[0, :n_classes].set(b2)

    full = lambda shape: pl.BlockSpec(shape, lambda: tuple(0 for _ in shape))
    kernel = functools.partial(_gat_kernel, heads=heads, hidden=hidden)

    out_p = pl.pallas_call(
        kernel,
        out_shape=jax.ShapeDtypeStruct((n, cp), jnp.float32),
        grid=(),
        in_specs=[full(adj_bias.shape), full(x_p.shape), full(w1_p.shape),
                  full(a1d_pk.shape), full(a1s_pk.shape), full(b1_p.shape),
                  full(w2_p.shape), full(a2d_pk.shape), full(a2s_pk.shape),
                  full(b2_p.shape)],
        out_specs=full((n, cp)),
        compiler_params=pltpu.CompilerParams(vmem_limit_bytes=8 << 20),
    )(adj_bias, x_p, w1_p, a1d_pk, a1s_pk, b1_p, w2_p, a2d_pk, a2s_pk, b2_p)
    return out_p[:, :n_classes]


# ----------------------------- helpers / reference ---------------------------

def glorot(key, shape):
    a = jnp.sqrt(6.0 / (shape[0] + shape[1]))
    return jax.random.uniform(key, shape, jnp.float32, minval=-a, maxval=a)


def build_adj_mask(key, n, avg_degree=6):
    """Random symmetric 0/1 adjacency with self-loops (GATConv adds self-loops)."""
    p = avg_degree / n
    upper = (jax.random.uniform(key, (n, n)) < p).astype(jnp.float32)
    upper = jnp.triu(upper, k=1)
    a = upper + upper.T
    return jnp.minimum(a + jnp.eye(n, dtype=jnp.float32), 1.0)


def reference_gat(adj_mask, x, w1, a1_src, a1_dst, b1, w2, a2_src, a2_dst, b2,
                  heads, hidden, n_classes):
    n = x.shape[0]
    mask = adj_mask > 0.0

    def layer(h_in, W, a_src, a_dst, nh, dout):
        z = (h_in @ W).reshape(n, nh, dout)
        s_src = jnp.einsum('nhd,hd->nh', z, a_src)
        s_dst = jnp.einsum('nhd,hd->nh', z, a_dst)
        e = s_dst[:, None, :] + s_src[None, :, :]              # [i, j, h]
        e = jnp.where(e >= 0.0, e, 0.2 * e)
        e = jnp.where(mask[:, :, None], e, -jnp.inf)
        alpha = jax.nn.softmax(e, axis=1)
        return jnp.einsum('ijh,jhd->ihd', alpha, z)

    h1 = layer(x, w1, a1_src, a1_dst, heads, hidden).reshape(n, heads * hidden) + b1
    h1 = jnp.where(h1 > 0.0, h1, jnp.exp(h1) - 1.0)            # ELU
    z2 = layer(h1, w2, a2_src, a2_dst, 1, n_classes)[:, 0, :] + b2
    return jax.nn.log_softmax(z2, axis=1)


if __name__ == "__main__":
    # Small shapes consistent with the module: num_features=32, hidden_unit=16,
    # heads=2 (conv1 output 32), num_classes=8, N=128 nodes.
    N, F_IN, HIDDEN, HEADS, N_CLASSES = 128, 32, 16, 2, 8

    key = jax.random.PRNGKey(0)
    keys = jax.random.split(key, 8)

    adj_mask = build_adj_mask(keys[0], N)
    x = jax.random.normal(keys[1], (N, F_IN), dtype=jnp.float32)

    w1 = glorot(keys[2], (F_IN, HEADS * HIDDEN))
    a1_src = glorot(keys[3], (HEADS, HIDDEN))
    a1_dst = glorot(keys[4], (HEADS, HIDDEN))
    b1 = jnp.zeros((HEADS * HIDDEN,), jnp.float32)     # GATConv bias init = zeros
    w2 = glorot(keys[5], (HEADS * HIDDEN, N_CLASSES))
    a2_src = glorot(keys[6], (1, N_CLASSES))
    a2_dst = glorot(keys[7], (1, N_CLASSES))
    b2 = jnp.zeros((N_CLASSES,), jnp.float32)

    out = gat_forward(adj_mask, x, w1, a1_src, a1_dst, b1, w2, a2_src, a2_dst, b2,
                      heads=HEADS, hidden=HIDDEN, n_classes=N_CLASSES)
    out = jax.block_until_ready(out)

    ref = reference_gat(adj_mask, x, w1, a1_src, a1_dst, b1, w2, a2_src, a2_dst, b2,
                        HEADS, HIDDEN, N_CLASSES)
    assert out.shape == (N, N_CLASSES)
    assert jnp.allclose(out, ref, atol=1e-3, rtol=1e-3), (
        "mismatch vs pure-JAX reference: max abs err "
        f"{float(jnp.max(jnp.abs(out - ref)))}")

    print("KERNEL_OK")
</pallas_src>

<mosaic_0001>
module attributes {stable_mosaic.version = 11 : i64} {
  func.func @_gat_kernel(%arg0: memref<128x128xf32, #tpu.memory_space<vmem>>, %arg1: memref<128x128xf32, #tpu.memory_space<vmem>>, %arg2: memref<128x128xf32, #tpu.memory_space<vmem>>, %arg3: memref<8x128xf32, #tpu.memory_space<vmem>>, %arg4: memref<8x128xf32, #tpu.memory_space<vmem>>, %arg5: memref<1x128xf32, #tpu.memory_space<vmem>>, %arg6: memref<128x128xf32, #tpu.memory_space<vmem>>, %arg7: memref<8x128xf32, #tpu.memory_space<vmem>>, %arg8: memref<8x128xf32, #tpu.memory_space<vmem>>, %arg9: memref<1x128xf32, #tpu.memory_space<vmem>>, %arg10: memref<128x128xf32, #tpu.memory_space<vmem>>) attributes {dimension_semantics = [], scalar_prefetch = 0 : i64, scratch_operands = 0 : i64, tpu.core_type = #tpu.core_type<tc>} {
    %c0 = arith.constant 0 : index
    %c0_0 = arith.constant 0 : index
    %0 = vector.load %arg0[%c0, %c0_0] : memref<128x128xf32, #tpu.memory_space<vmem>>, vector<128x128xf32>
    %c0_1 = arith.constant 0 : index
    %c0_2 = arith.constant 0 : index
    %1 = vector.load %arg1[%c0_1, %c0_2] : memref<128x128xf32, #tpu.memory_space<vmem>>, vector<128x128xf32>
    %c0_3 = arith.constant 0 : index
    %c0_4 = arith.constant 0 : index
    %2 = vector.load %arg2[%c0_3, %c0_4] : memref<128x128xf32, #tpu.memory_space<vmem>>, vector<128x128xf32>
    %cst = arith.constant dense<0.000000e+00> : vector<128x128xf32>
    %3 = tpu.matmul %1, %2, %cst {dimension_numbers = #tpu.dot_dimension_numbers<[1], [0], [0], [1], [0, 0, 1, 1], [], []>} : vector<128x128xf32>, vector<128x128xf32>, vector<128x128xf32> -> vector<128x128xf32>
    %c0_5 = arith.constant 0 : index
    %c0_6 = arith.constant 0 : index
    %4 = vector.load %arg3[%c0_5, %c0_6] : memref<8x128xf32, #tpu.memory_space<vmem>>, vector<8x128xf32>
    %cst_7 = arith.constant dense<0.000000e+00> : vector<128x8xf32>
    %5 = tpu.matmul %3, %4, %cst_7 {dimension_numbers = #tpu.dot_dimension_numbers<[1], [1], [0], [0], [0, 0, 1, 0], [], []>} : vector<128x128xf32>, vector<8x128xf32>, vector<128x8xf32> -> vector<128x8xf32>
    %c0_8 = arith.constant 0 : index
    %c0_9 = arith.constant 0 : index
    %6 = vector.load %arg4[%c0_8, %c0_9] : memref<8x128xf32, #tpu.memory_space<vmem>>, vector<8x128xf32>
    %cst_10 = arith.constant dense<0.000000e+00> : vector<8x128xf32>
    %7 = tpu.matmul %6, %3, %cst_10 {dimension_numbers = #tpu.dot_dimension_numbers<[1], [1], [0], [0], [0, 0, 1, 0], [], []>} : vector<8x128xf32>, vector<128x128xf32>, vector<8x128xf32> -> vector<8x128xf32>
    %8 = tpu.iota {dimensions = array<i32: 1>} : vector<1x128xi32>
    %9 = vector.extract_strided_slice %5 {offsets = [0, 0], sizes = [128, 1], strides = [1, 1]} : vector<128x8xf32> to vector<128x1xf32>
    %10 = vector.extract_strided_slice %7 {offsets = [0, 0], sizes = [1, 128], strides = [1, 1]} : vector<8x128xf32> to vector<1x128xf32>
    %11 = vector.broadcast %9 : vector<128x1xf32> to vector<128x128xf32>
    %12 = vector.broadcast %10 : vector<1x128xf32> to vector<128x128xf32>
    %13 = arith.addf %11, %12 : vector<128x128xf32>
    %cst_11 = arith.constant 2.000000e-01 : f32
    %14 = vector.broadcast %cst_11 : f32 to vector<128x128xf32>
    %15 = arith.mulf %14, %13 : vector<128x128xf32>
    %16 = arith.maximumf %13, %15 : vector<128x128xf32>
    %17 = arith.addf %16, %0 : vector<128x128xf32>
    %cst_12 = arith.constant dense<0xFF800000> : vector<128xf32>
    %18 = vector.multi_reduction <maximumf>, %17, %cst_12 [1] : vector<128x128xf32> to vector<128xf32>
    %19 = vector.shape_cast %18 : vector<128xf32> to vector<128x1xf32>
    %20 = vector.broadcast %19 : vector<128x1xf32> to vector<128x128xf32>
    %21 = arith.subf %17, %20 : vector<128x128xf32>
    %22 = math.exp %21 : vector<128x128xf32>
    %cst_13 = arith.constant dense<0.000000e+00> : vector<128xf32>
    %23 = vector.multi_reduction <add>, %22, %cst_13 [1] : vector<128x128xf32> to vector<128xf32>
    %24 = vector.shape_cast %23 : vector<128xf32> to vector<128x1xf32>
    %cst_14 = arith.constant dense<0.000000e+00> : vector<128x128xf32>
    %25 = tpu.matmul %22, %3, %cst_14 {dimension_numbers = #tpu.dot_dimension_numbers<[1], [0], [0], [1], [0, 0, 1, 1], [], []>} : vector<128x128xf32>, vector<128x128xf32>, vector<128x128xf32> -> vector<128x128xf32>
    %c0_i32 = arith.constant 0 : i32
    %26 = vector.broadcast %c0_i32 : i32 to vector<1x128xi32>
    %27 = arith.cmpi sge, %8, %26 : vector<1x128xi32>
    %c16_i32 = arith.constant 16 : i32
    %28 = vector.broadcast %c16_i32 : i32 to vector<1x128xi32>
    %29 = arith.cmpi slt, %8, %28 : vector<1x128xi32>
    %30 = arith.andi %27, %29 : vector<1x128xi1>
    %31 = tpu.reciprocal %24 : vector<128x1xf32> -> vector<128x1xf32>
    %cst_15 = arith.constant 0.000000e+00 : f32
    %32 = vector.shape_cast %30 : vector<1x128xi1> to vector<1x128xi1>
    %33 = vector.broadcast %32 : vector<1x128xi1> to vector<128x128xi1>
    %34 = vector.shape_cast %31 : vector<128x1xf32> to vector<128x1xf32>
    %35 = vector.broadcast %34 : vector<128x1xf32> to vector<128x128xf32>
    %36 = vector.broadcast %cst_15 : f32 to vector<128x128xf32>
    %37 = arith.select %33, %35, %36 : vector<128x128xi1>, vector<128x128xf32>
    %38 = arith.mulf %25, %37 : vector<128x128xf32>
    %39 = vector.extract_strided_slice %5 {offsets = [0, 1], sizes = [128, 1], strides = [1, 1]} : vector<128x8xf32> to vector<128x1xf32>
    %40 = vector.extract_strided_slice %7 {offsets = [1, 0], sizes = [1, 128], strides = [1, 1]} : vector<8x128xf32> to vector<1x128xf32>
    %41 = vector.broadcast %39 : vector<128x1xf32> to vector<128x128xf32>
    %42 = vector.broadcast %40 : vector<1x128xf32> to vector<128x128xf32>
    %43 = arith.addf %41, %42 : vector<128x128xf32>
    %cst_16 = arith.constant 2.000000e-01 : f32
    %44 = vector.broadcast %cst_16 : f32 to vector<128x128xf32>
    %45 = arith.mulf %44, %43 : vector<128x128xf32>
    %46 = arith.maximumf %43, %45 : vector<128x128xf32>
    %47 = arith.addf %46, %0 : vector<128x128xf32>
    %cst_17 = arith.constant dense<0xFF800000> : vector<128xf32>
    %48 = vector.multi_reduction <maximumf>, %47, %cst_17 [1] : vector<128x128xf32> to vector<128xf32>
    %49 = vector.shape_cast %48 : vector<128xf32> to vector<128x1xf32>
    %50 = vector.broadcast %49 : vector<128x1xf32> to vector<128x128xf32>
    %51 = arith.subf %47, %50 : vector<128x128xf32>
    %52 = math.exp %51 : vector<128x128xf32>
    %cst_18 = arith.constant dense<0.000000e+00> : vector<128xf32>
    %53 = vector.multi_reduction <add>, %52, %cst_18 [1] : vector<128x128xf32> to vector<128xf32>
    %54 = vector.shape_cast %53 : vector<128xf32> to vector<128x1xf32>
    %cst_19 = arith.constant dense<0.000000e+00> : vector<128x128xf32>
    %55 = tpu.matmul %52, %3, %cst_19 {dimension_numbers = #tpu.dot_dimension_numbers<[1], [0], [0], [1], [0, 0, 1, 1], [], []>} : vector<128x128xf32>, vector<128x128xf32>, vector<128x128xf32> -> vector<128x128xf32>
    %c16_i32_20 = arith.constant 16 : i32
    %56 = vector.broadcast %c16_i32_20 : i32 to vector<1x128xi32>
    %57 = arith.cmpi sge, %8, %56 : vector<1x128xi32>
    %c32_i32 = arith.constant 32 : i32
    %58 = vector.broadcast %c32_i32 : i32 to vector<1x128xi32>
    %59 = arith.cmpi slt, %8, %58 : vector<1x128xi32>
    %60 = arith.andi %57, %59 : vector<1x128xi1>
    %61 = tpu.reciprocal %54 : vector<128x1xf32> -> vector<128x1xf32>
    %cst_21 = arith.constant 0.000000e+00 : f32
    %62 = vector.shape_cast %60 : vector<1x128xi1> to vector<1x128xi1>
    %63 = vector.broadcast %62 : vector<1x128xi1> to vector<128x128xi1>
    %64 = vector.shape_cast %61 : vector<128x1xf32> to vector<128x1xf32>
    %65 = vector.broadcast %64 : vector<128x1xf32> to vector<128x128xf32>
    %66 = vector.broadcast %cst_21 : f32 to vector<128x128xf32>
    %67 = arith.select %63, %65, %66 : vector<128x128xi1>, vector<128x128xf32>
    %68 = arith.mulf %55, %67 : vector<128x128xf32>
    %69 = arith.addf %38, %68 : vector<128x128xf32>
    %c0_22 = arith.constant 0 : index
    %c0_23 = arith.constant 0 : index
    %70 = vector.load %arg5[%c0_22, %c0_23] : memref<1x128xf32, #tpu.memory_space<vmem>>, vector<1x128xf32>
    %71 = vector.broadcast %70 : vector<1x128xf32> to vector<128x128xf32>
    %72 = arith.addf %69, %71 : vector<128x128xf32>
    %cst_24 = arith.constant 0.000000e+00 : f32
    %73 = vector.broadcast %cst_24 : f32 to vector<128x128xf32>
    %74 = arith.cmpf ogt, %72, %73 : vector<128x128xf32>
    %75 = math.exp %72 : vector<128x128xf32>
    %cst_25 = arith.constant 1.000000e+00 : f32
    %76 = vector.broadcast %cst_25 : f32 to vector<128x128xf32>
    %77 = arith.subf %75, %76 : vector<128x128xf32>
    %78 = arith.select %74, %72, %77 : vector<128x128xi1>, vector<128x128xf32>
    %c0_26 = arith.constant 0 : index
    %c0_27 = arith.constant 0 : index
    %79 = vector.load %arg6[%c0_26, %c0_27] : memref<128x128xf32, #tpu.memory_space<vmem>>, vector<128x128xf32>
    %cst_28 = arith.constant dense<0.000000e+00> : vector<128x128xf32>
    %80 = tpu.matmul %78, %79, %cst_28 {dimension_numbers = #tpu.dot_dimension_numbers<[1], [0], [0], [1], [0, 0, 1, 1], [], []>} : vector<128x128xf32>, vector<128x128xf32>, vector<128x128xf32> -> vector<128x128xf32>
    %c0_29 = arith.constant 0 : index
    %c0_30 = arith.constant 0 : index
    %81 = vector.load %arg7[%c0_29, %c0_30] : memref<8x128xf32, #tpu.memory_space<vmem>>, vector<8x128xf32>
    %cst_31 = arith.constant dense<0.000000e+00> : vector<128x8xf32>
    %82 = tpu.matmul %80, %81, %cst_31 {dimension_numbers = #tpu.dot_dimension_numbers<[1], [1], [0], [0], [0, 0, 1, 0], [], []>} : vector<128x128xf32>, vector<8x128xf32>, vector<128x8xf32> -> vector<128x8xf32>
    %c0_32 = arith.constant 0 : index
    %c0_33 = arith.constant 0 : index
    %83 = vector.load %arg8[%c0_32, %c0_33] : memref<8x128xf32, #tpu.memory_space<vmem>>, vector<8x128xf32>
    %cst_34 = arith.constant dense<0.000000e+00> : vector<8x128xf32>
    %84 = tpu.matmul %83, %80, %cst_34 {dimension_numbers = #tpu.dot_dimension_numbers<[1], [1], [0], [0], [0, 0, 1, 0], [], []>} : vector<8x128xf32>, vector<128x128xf32>, vector<8x128xf32> -> vector<8x128xf32>
    %85 = vector.extract_strided_slice %82 {offsets = [0, 0], sizes = [128, 1], strides = [1, 1]} : vector<128x8xf32> to vector<128x1xf32>
    %86 = vector.extract_strided_slice %84 {offsets = [0, 0], sizes = [1, 128], strides = [1, 1]} : vector<8x128xf32> to vector<1x128xf32>
    %87 = vector.broadcast %85 : vector<128x1xf32> to vector<128x128xf32>
    %88 = vector.broadcast %86 : vector<1x128xf32> to vector<128x128xf32>
    %89 = arith.addf %87, %88 : vector<128x128xf32>
    %cst_35 = arith.constant 2.000000e-01 : f32
    %90 = vector.broadcast %cst_35 : f32 to vector<128x128xf32>
    %91 = arith.mulf %90, %89 : vector<128x128xf32>
    %92 = arith.maximumf %89, %91 : vector<128x128xf32>
    %93 = arith.addf %92, %0 : vector<128x128xf32>
    %cst_36 = arith.constant dense<0xFF800000> : vector<128xf32>
    %94 = vector.multi_reduction <maximumf>, %93, %cst_36 [1] : vector<128x128xf32> to vector<128xf32>
    %95 = vector.shape_cast %94 : vector<128xf32> to vector<128x1xf32>
    %96 = vector.broadcast %95 : vector<128x1xf32> to vector<128x128xf32>
    %97 = arith.subf %93, %96 : vector<128x128xf32>
    %98 = math.exp %97 : vector<128x128xf32>
    %cst_37 = arith.constant dense<0.000000e+00> : vector<128xf32>
    %99 = vector.multi_reduction <add>, %98, %cst_37 [1] : vector<128x128xf32> to vector<128xf32>
    %100 = vector.shape_cast %99 : vector<128xf32> to vector<128x1xf32>
    %cst_38 = arith.constant dense<0.000000e+00> : vector<128x128xf32>
    %101 = tpu.matmul %98, %80, %cst_38 {dimension_numbers = #tpu.dot_dimension_numbers<[1], [0], [0], [1], [0, 0, 1, 1], [], []>} : vector<128x128xf32>, vector<128x128xf32>, vector<128x128xf32> -> vector<128x128xf32>
    %102 = tpu.reciprocal %100 : vector<128x1xf32> -> vector<128x1xf32>
    %103 = vector.broadcast %102 : vector<128x1xf32> to vector<128x128xf32>
    %104 = arith.mulf %101, %103 : vector<128x128xf32>
    %c0_39 = arith.constant 0 : index
    %c0_40 = arith.constant 0 : index
    %105 = vector.load %arg9[%c0_39, %c0_40] : memref<1x128xf32, #tpu.memory_space<vmem>>, vector<1x128xf32>
    %106 = vector.broadcast %105 : vector<1x128xf32> to vector<128x128xf32>
    %107 = arith.addf %104, %106 : vector<128x128xf32>
    %cst_41 = arith.constant dense<0xFF800000> : vector<128xf32>
    %108 = vector.multi_reduction <maximumf>, %107, %cst_41 [1] : vector<128x128xf32> to vector<128xf32>
    %109 = vector.shape_cast %108 : vector<128xf32> to vector<128x1xf32>
    %110 = vector.broadcast %109 : vector<128x1xf32> to vector<128x128xf32>
    %111 = arith.subf %107, %110 : vector<128x128xf32>
    %112 = math.exp %111 : vector<128x128xf32>
    %cst_42 = arith.constant dense<0.000000e+00> : vector<128xf32>
    %113 = vector.multi_reduction <add>, %112, %cst_42 [1] : vector<128x128xf32> to vector<128xf32>
    %114 = vector.shape_cast %113 : vector<128xf32> to vector<128x1xf32>
    %115 = math.log %114 : vector<128x1xf32>
    %116 = vector.broadcast %115 : vector<128x1xf32> to vector<128x128xf32>
    %117 = arith.subf %111, %116 : vector<128x128xf32>
    %c0_43 = arith.constant 0 : index
    %c0_44 = arith.constant 0 : index
    %118 = vector.load %arg10[%c0_43, %c0_44] : memref<128x128xf32, #tpu.memory_space<vmem>>, vector<128x128xf32>
    tpu.vector_store %arg10[%c0_43, %c0_44], %117 {strides = array<i32>} : memref<128x128xf32, #tpu.memory_space<vmem>>, vector<128x128xf32>,
    return
  }
}

</mosaic_0001>

<bundles_post_ra>
// kernel: tpu_custom_call.1
= control target key start
LH: loop header
LB: loop body
LE: loop exit
PB: predicated region body
PF: predicated region fallthrough
CT: control target
= control target key end

     0   :  { %15 = vsyncpa [#allocation3], 0  ;;  %s4962_s0 = inlined_call_operand.hbm [shape: f32[128,128], index: 0, kind: input, shape index: {}]   ;;  %s4963_s1 = inlined_call_operand.hbm [shape: f32[128,128], index: 1, kind: input, shape index: {}]   ;;  %s4964_s2 = inlined_call_operand.hbm [shape: f32[128,128], index: 2, kind: input, shape index: {}]   ;;  %s4965_s3 = inlined_call_operand.vmem [shape: f32[8,128], index: 3, kind: input, shape index: {}]   ;;  %s4966_s4 = inlined_call_operand.hbm [shape: f32[8,128], index: 4, kind: input, shape index: {}]   ;;  %s4967_s5 = inlined_call_operand.vmem [shape: f32[1,128], index: 5, kind: input, shape index: {}]   ;;  %s4968_s6 = inlined_call_operand.hbm [shape: f32[128,128], index: 6, kind: input, shape index: {}]   ;;  %s4969_s7 = inlined_call_operand.vmem [shape: f32[8,128], index: 7, kind: input, shape index: {}]   ;;  %s4970_s8 = inlined_call_operand.vmem [shape: f32[8,128], index: 8, kind: input, shape index: {}]   ;;  %s4971_s9 = inlined_call_operand.vmem [shape: f32[1,128], index: 9, kind: input, shape index: {}]   ;;  %s4972_s10 = inlined_call_operand.hbm [shape: f32[128,128], index: 10, kind: output, shape index: {}]  }
   0x1   :  { %16 = vsyncpa [#allocation6], 0 }
   0x2   :  { %17 = vsyncpa [#allocation9], 0 }
   0x3   :  { %18 = vsyncpa [#allocation4], 0  ;;  %s3887_s13 = smov [#allocation5]   ;;  %s3888_s15 = smov [#allocation8]  }
   0x4   :  { %s36_s14 = sshll.u32 %s3887_s13, 4  ;;  %s63_s16 = sshll.u32 %s3888_s15, 4  ;;  %s37_s14 = int_to_ptr.vmem [resolvable:$true] %s36_s14  ;;  %s64_s16 = int_to_ptr.vmem [resolvable:$true] %s63_s16 }
   0x5   :  { %s3747_s19 = scalar_lea.hbm %s4963_s1, 2048 }
   0x6   :  { %p3748_p0 = scmp.ne.s32.totalorder %s4963_s1, %s3747_s19  ;;  %p3751_p1 = scmp.lt.u32.totalorder %s3747_s19, %s4963_s1 }
   0x8   :  { %p3753_p2 = pnand %p3751_p1, %p3748_p0 }
   0xa   :  { %3756 = shalt.err (!%p3753_p2)
}
   0xb   :  { %s3757_s24 = scalar_lea.vmem %s37_s14, 2048  ;;  %p3762_p4 = scmp.lt.s32.totalorder %s37_s14, %s37_s14 }
   0xc   :  { %p3758_p3 = scmp.ne.s32.totalorder %s37_s14, %s3757_s24  ;;  %p3763_p5 = scmp.lt.s32.totalorder %s3757_s24, %s3757_s24 }
   0xe   :  { %p3764_p6 = por %p3763_p5, %p3762_p4 }
  0x10   :  { %p3765_p7 = pnand %p3764_p6, %p3758_p3 }
  0x12   :  { %3768 = shalt.err (!%p3765_p7)
}
  0x13   :  { %s3889_s25 = smov 128   ;;  %s3890_s26 = smov 8  }
  0x14   :  { %42 = dma.hbm_to_vmem [thread:$0]  %s4963_s1, 2048, %s37_s14, [#allocation6], %s3889_s25, %s3889_s25, %s3890_s26  }
  0x15   :  { %s3769_s11 = scalar_lea.hbm %s4966_s4, 128 }
  0x16   :  { %p3770_p8 = scmp.ne.s32.totalorder %s4966_s4, %s3769_s11  ;;  %p3773_p9 = scmp.lt.u32.totalorder %s3769_s11, %s4966_s4 }
  0x18   :  { %p3775_p10 = pnand %p3773_p9, %p3770_p8 }
  0x1a   :  { %3778 = shalt.err (!%p3775_p10)
}
  0x1b   :  { %s3779_s18 = scalar_lea.vmem %s64_s16, 128  ;;  %p3784_p12 = scmp.lt.s32.totalorder %s64_s16, %s64_s16 }
  0x1c   :  { %p3780_p11 = scmp.ne.s32.totalorder %s64_s16, %s3779_s18  ;;  %p3785_p13 = scmp.lt.s32.totalorder %s3779_s18, %s3779_s18 }
  0x1e   :  { %p3786_p0 = por %p3785_p13, %p3784_p12 }
  0x20   :  { %p3787_p1 = pnand %p3786_p0, %p3780_p11 }
  0x22   :  { %3790 = shalt.err (!%p3787_p1)
}
  0x23   :  { %66 = dma.hbm_to_vmem [thread:$0]  %s4966_s4, 128, %s64_s16, [#allocation9]  }
  0x24   :  { %s3891_s19 = smov [#allocation2]   ;;  %s3892_s21 = smov [#allocation7]  }
  0x25   :  { %s24_s20 = sshll.u32 %s3891_s19, 4  ;;  %s48_s22 = sshll.u32 %s3892_s21, 4  ;;  %s25_s20 = int_to_ptr.vmem [resolvable:$true] %s24_s20  ;;  %s3982_s22 = int_to_ptr.vmem [resolvable:$true] %s48_s22 }
  0x26   :  { %s3791_s27 = scalar_lea.hbm %s4962_s0, 2048 }
  0x27   :  { %p3792_p2 = scmp.ne.s32.totalorder %s4962_s0, %s3791_s27  ;;  %p3795_p3 = scmp.lt.u32.totalorder %s3791_s27, %s4962_s0 }
  0x29   :  { %p3797_p4 = pnand %p3795_p3, %p3792_p2 }
  0x2b   :  { %3800 = shalt.err (!%p3797_p4)
}
  0x2c   :  { %s3801_s4 = scalar_lea.vmem %s25_s20, 2048  ;;  %p3806_p6 = scmp.lt.s32.totalorder %s25_s20, %s25_s20 }
  0x2d   :  { %p3802_p5 = scmp.ne.s32.totalorder %s25_s20, %s3801_s4  ;;  %p3807_p7 = scmp.lt.s32.totalorder %s3801_s4, %s3801_s4 }
  0x2f   :  { %p3808_p8 = por %p3807_p7, %p3806_p6 }
  0x31   :  { %p3809_p9 = pnand %p3808_p8, %p3802_p5 }
  0x33   :  { %3812 = shalt.err (!%p3809_p9)
}
  0x34   :  { %30 = dma.hbm_to_vmem [thread:$0]  %s4962_s0, 2048, %s25_s20, [#allocation3], %s3889_s25, %s3889_s25, %s3890_s26  }
  0x35   :  { %s3813_s17 = scalar_lea.hbm %s4964_s2, 2048 }
  0x36   :  { %p3814_p10 = scmp.ne.s32.totalorder %s4964_s2, %s3813_s17  ;;  %p3817_p11 = scmp.lt.u32.totalorder %s3813_s17, %s4964_s2 }
  0x38   :  { %p3819_p12 = pnand %p3817_p11, %p3814_p10 }
  0x3a   :  { %3822 = shalt.err (!%p3819_p12)
}
  0x3b   :  { %s3823_s21 = scalar_lea.vmem %s3982_s22, 2048  ;;  %p3828_p0 = scmp.lt.s32.totalorder %s3982_s22, %s3982_s22 }
  0x3c   :  { %p3824_p13 = scmp.ne.s32.totalorder %s3982_s22, %s3823_s21  ;;  %p3829_p1 = scmp.lt.s32.totalorder %s3823_s21, %s3823_s21 }
  0x3e   :  { %p3830_p2 = por %p3829_p1, %p3828_p0 }
  0x40   :  { %p3831_p3 = pnand %p3830_p2, %p3824_p13 }
  0x42   :  { %3834 = shalt.err (!%p3831_p3)
}
  0x43   :  { %54 = dma.hbm_to_vmem [thread:$0]  %s4964_s2, 2048, %s3982_s22, [#allocation6], %s3889_s25, %s3889_s25, %s3890_s26  }
  0x44   :  { %s3893_s23 = smov [#allocation10]   ;;  %s3835_s29 = scalar_lea.hbm %s4968_s6, 2048 }
  0x45   :  { %s74_s24 = sshll.u32 %s3893_s23, 4  ;;  %p3836_p4 = scmp.ne.s32.totalorder %s4968_s6, %s3835_s29  ;;  %s75_s24 = int_to_ptr.vmem [resolvable:$true] %s74_s24 }
  0x46   :  { %p3839_p5 = scmp.lt.u32.totalorder %s3835_s29, %s4968_s6 }
  0x48   :  { %p3841_p6 = pnand %p3839_p5, %p3836_p4 }
  0x4a   :  { %3844 = shalt.err (!%p3841_p6)
}
  0x4b   :  { %s3845_s12 = scalar_lea.vmem %s75_s24, 2048  ;;  %p3850_p8 = scmp.lt.s32.totalorder %s75_s24, %s75_s24 }
  0x4c   :  { %p3846_p7 = scmp.ne.s32.totalorder %s75_s24, %s3845_s12  ;;  %p3851_p9 = scmp.lt.s32.totalorder %s3845_s12, %s3845_s12 }
  0x4e   :  { %p3852_p10 = por %p3851_p9, %p3850_p8 }
  0x50   :  { %p3853_p11 = pnand %p3852_p10, %p3846_p7 }
  0x52   :  { %3856 = shalt.err (!%p3853_p11)
}
  0x53   :  { %80 = dma.hbm_to_vmem [thread:$0]  %s4968_s6, 2048, %s75_s24, [#allocation9], %s3889_s25, %s3889_s25, %s3890_s26  }
  0x54   :  { %3879 = dma.done.wait [#allocation3], 2048  }
  0x55   :  { %3880 = vsyncadd [#allocation3], 4294965248 }
  0x56   :  { %3881 = dma.done.wait [#allocation6], 4096  }
  0x57   :  { %3882 = vsyncadd [#allocation6], 4294963200 }
  0x58   :  { %3883 = dma.done.wait [#allocation9], 2176  }
  0x59   :  { %3884 = vsyncadd [#allocation9], 4294965120  ;;  %v134_v0 = vld [vmem:[#allocation7] sm:$0xff]  ;;  %v135_v1 = vld [vmem:[#allocation7 + $0x8] sm:$0xff]  ;;  %v4976_v41 = vmov 0.0|0.0   ;;  %v3895_v42 = vmov 1  }
  0x5a   :  { %v136_v2 = vld [vmem:[#allocation7 + $0x10] sm:$0xff]  ;;  %v3214_v3 = vpack.c.bf16 %v135_v1, %v134_v0  ;;  %v137_v4 = vld [vmem:[#allocation7 + $0x18] sm:$0xff]  ;;  %v138_v6 = vld [vmem:[#allocation7 + $0x20] sm:$0xff]  ;;  %3435 = vset.pattern.permute.xlu1 %v3895_v42  ;;  %3436 = vset.pattern.permute.xlu0 %v3895_v42  ;;  %vm3896_vm0 = vmmov 0  }
  0x5b   :  { %v3218_v5 = vpack.c.bf16 %v137_v4, %v136_v2  ;;  %v139_v7 = vld [vmem:[#allocation7 + $0x28] sm:$0xff]  ;;  %v118_v9 = vld [vmem:[#allocation5] sm:$0xff]  ;;  %v140_v10 = vld [vmem:[#allocation7 + $0x30] sm:$0xff] }
  0x5c   :  { %3215 = vmatprep.subr.bf16.mxu0 %v3214_v3  ;;  %v3222_v8 = vpack.c.bf16 %v139_v7, %v138_v6  ;;  %v141_v11 = vld [vmem:[#allocation7 + $0x38] sm:$0xff]  ;;  %2844 = vmatprep.mubr.f32.mxu0 %v118_v9  ;;  %v142_v13 = vld [vmem:[#allocation7 + $0x40] sm:$0xff]  ;;  %v143_v14 = vld [vmem:[#allocation7 + $0x48] sm:$0xff] }
  0x5d   :  { %3217 = vmatpush3.bf16.msra.mxu0 %v3214_v3  ;;  %v3226_v12 = vpack.c.bf16 %v141_v11, %v140_v10  ;;  %v295_v15 = vld [vmem:[%s4965_s3] sm:$0xff]  ;;  %v3230_v16 = vpack.c.bf16 %v143_v14, %v142_v13  ;;  %v144_v17 = vld [vmem:[#allocation7 + $0x50] sm:$0xff]  ;;  %v145_v18 = vld [vmem:[#allocation7 + $0x58] sm:$0xff]  ;;  %v4974_v3 = vmov 0.0  }
  0x5e   :  { %3219 = vmatprep.subr.bf16.mxu0 %v3218_v5  ;;  %2868 = vmatprep.subr.mxu1 %v295_v15  ;;  %v3234_v19 = vpack.c.bf16 %v145_v18, %v144_v17  ;;  %v146_v20 = vld [vmem:[#allocation7 + $0x60] sm:$0xff]  ;;  %v147_v21 = vld [vmem:[#allocation7 + $0x68] sm:$0xff]  ;;  %v148_v23 = vld [vmem:[#allocation7 + $0x70] sm:$0xff] }
  0x5f   :  { %2869 = vmatpush3.xpose.msra.mxu1 %v295_v15  ;;  %v3238_v22 = vpack.c.bf16 %v147_v21, %v146_v20  ;;  %v149_v24 = vld [vmem:[#allocation7 + $0x78] sm:$0xff]  ;;  %v119_v26 = vld [vmem:[#allocation5 + $0x8] sm:$0xff]  ;;  %v120_v27 = vld [vmem:[#allocation5 + $0x10] sm:$0xff] }
  0x60   :  { %v3242_v25 = vpack.c.bf16 %v149_v24, %v148_v23  ;;  %v121_v28 = vld [vmem:[#allocation5 + $0x18] sm:$0xff]  ;;  %v122_v29 = vld [vmem:[#allocation5 + $0x20] sm:$0xff]  ;;  %v123_v30 = vld [vmem:[#allocation5 + $0x28] sm:$0xff]  ;;  %3246 = vmatprep.subr.bf16.mxu1 %v4976_v41 }
  0x61   :  { %3221 = vmatpush3.bf16.msra.mxu0 %v3218_v5  ;;  %v124_v31 = vld [vmem:[#allocation5 + $0x30] sm:$0xff]  ;;  %v125_v32 = vld [vmem:[#allocation5 + $0x38] sm:$0xff]  ;;  %v126_v33 = vld [vmem:[#allocation5 + $0x40] sm:$0xff] }
  0x62   :  { %3223 = vmatprep.subr.bf16.mxu0 %v3222_v8  ;;  %v127_v34 = vld [vmem:[#allocation5 + $0x48] sm:$0xff]  ;;  %v128_v35 = vld [vmem:[#allocation5 + $0x50] sm:$0xff]  ;;  %v129_v36 = vld [vmem:[#allocation5 + $0x58] sm:$0xff] }
  0x63   :  { %v130_v37 = vld [vmem:[#allocation5 + $0x60] sm:$0xff]  ;;  %v131_v38 = vld [vmem:[#allocation5 + $0x68] sm:$0xff]  ;;  %v132_v39 = vld [vmem:[#allocation5 + $0x70] sm:$0xff] }
  0x64   :  { %v133_v40 = vld [vmem:[#allocation5 + $0x78] sm:$0xff]  ;;  %v441_v4 = vld [vmem:[#allocation8] sm:$0xff] }
  0x65   :  { %3225 = vmatpush3.bf16.msra.mxu0 %v3222_v8  ;;  %v3898_v8 = vmov 0  }
  0x66   :  { %3227 = vmatprep.subr.bf16.mxu0 %v3226_v12 }
  0x69   :  { %3229 = vmatpush3.bf16.msra.mxu0 %v3226_v12 }
  0x6a   :  { %3231 = vmatprep.subr.bf16.mxu0 %v3230_v16 }
  0x6d   :  { %3233 = vmatpush3.bf16.msra.mxu0 %v3230_v16 }
  0x6e   :  { %3235 = vmatprep.subr.bf16.mxu0 %v3234_v19 }
  0x71   :  { %3237 = vmatpush3.bf16.msra.mxu0 %v3234_v19 }
  0x72   :  { %3239 = vmatprep.subr.bf16.mxu0 %v3238_v22 }
  0x75   :  { %3241 = vmatpush3.bf16.msra.mxu0 %v3238_v22 }
  0x76   :  { %3243 = vmatprep.subr.bf16.mxu0 %v3242_v25 }
  0x79   :  { %3245 = vmatpush3.bf16.msra.mxu0 %v3242_v25 }
  0x7c   :  { %2845 = vmatmul.mubr.f32.vlgmr.msra.gmra.mrb[0].mxu0 %v119_v26 }
  0x7d   :  { %2847 = vmatprep.mubr.f32.mxu0 %v120_v27 }
  0x80   :  { %2848 = vmatmul.mubr.f32.gmra.mrb[2].mxu0 %v121_v28 }
  0x81   :  { %2850 = vmatprep.mubr.f32.mxu0 %v122_v29 }
  0x84   :  { %2851 = vmatmul.mubr.f32.gmra.mrb[4].mxu0 %v123_v30 }
  0x85   :  { %2853 = vmatprep.mubr.f32.mxu0 %v124_v31  ;;  %v4975_v31 = vlaneseq }
  0x88   :  { %2854 = vmatmul.mubr.f32.gmra.mrb[6].mxu0 %v125_v32 }
  0x89   :  { %2856 = vmatprep.mubr.f32.mxu0 %v126_v33 }
  0x8c   :  { %2857 = vmatmul.mubr.f32.gmra.mrb[8].mxu0 %v127_v34  ;;  %v4107_v34 = vshrl.u32 %v4975_v31, 7 }
  0x8d   :  { %2859 = vmatprep.mubr.f32.mxu0 %v128_v35 }
  0x8e   :  { %4979 = vst [vmem:[#allocation16_spill] sm:$0xff] %v4107_v34  ;;  %v4973_v35 = vsub.s32 0, %v4107_v34 }
  0x90   :  { %2860 = vmatmul.mubr.f32.gmra.mrb[10].mxu0 %v129_v36 }
  0x91   :  { %2862 = vmatprep.mubr.f32.mxu0 %v130_v37 }
  0x94   :  { %2863 = vmatmul.mubr.f32.gmra.mrb[12].mxu0 %v131_v38 }
  0x95   :  { %2865 = vmatprep.mubr.f32.mxu0 %v132_v39 }
  0x98   :  { %2866 = vmatmul.mubr.f32.gmra.mrb[14].mxu0 %v133_v40 }
 0x14f   :  { %v2846_v43 = vpop.f32.mrb[0].mxu0 }
 0x150   :  { %v216_v44 = vpop.f32.mrb[1].mxu0 }
 0x151   :  { %v4040_v45 = vpack.c.bf16 %v2846_v43, %v216_v44  ;;  %2870 = vmatprep.mubr.f32.mxu1 %v216_v44 }
 0x152   :  { %2871 = vmatmul.mubr.f32.vlgmr.msra.gmra.mrb[0].mxu1 %v2846_v43 }
 0x153   :  { %v2849_v46 = vpop.f32.mrb[2].mxu0  ;;  %3248 = vmatpush3.bf16.xpose.msra.mxu1 %v4040_v45  ;;  %3271 = vmatprep.subr.bf16.mxu0 %v4040_v45 }
 0x154   :  { %v226_v47 = vpop.f32.mrb[3].mxu0  ;;  %3273 = vmatpush3.bf16.msra.mxu0 %v4040_v45  ;;  %3249 = vmatprep.subr.bf16.mxu1 %v4976_v41 }
 0x155   :  { %v4046_v48 = vpack.c.bf16 %v2849_v46, %v226_v47  ;;  %2873 = vmatprep.mubr.f32.mxu1 %v226_v47 }
 0x156   :  { %2874 = vmatmul.mubr.f32.gmra.mrb[2].mxu1 %v2849_v46 }
 0x157   :  { %v2852_v49 = vpop.f32.mrb[4].mxu0  ;;  %3275 = vmatprep.subr.bf16.mxu0 %v4046_v48 }
 0x158   :  { %v236_v50 = vpop.f32.mrb[5].mxu0  ;;  %3277 = vmatpush3.bf16.msra.mxu0 %v4046_v48 }
 0x159   :  { %v4050_v51 = vpack.c.bf16 %v2852_v49, %v236_v50  ;;  %2876 = vmatprep.mubr.f32.mxu1 %v236_v50 }
 0x15a   :  { %2877 = vmatmul.mubr.f32.gmra.mrb[4].mxu1 %v2852_v49 }
 0x15b   :  { %v2855_v52 = vpop.f32.mrb[6].mxu0  ;;  %3251 = vmatpush3.bf16.xpose.msra.mxu1 %v4046_v48  ;;  %3279 = vmatprep.subr.bf16.mxu0 %v4050_v51 }
 0x15c   :  { %v246_v53 = vpop.f32.mrb[7].mxu0  ;;  %3281 = vmatpush3.bf16.msra.mxu0 %v4050_v51  ;;  %3252 = vmatprep.subr.bf16.mxu1 %v4976_v41 }
 0x15d   :  { %v4056_v54 = vpack.c.bf16 %v2855_v52, %v246_v53  ;;  %2879 = vmatprep.mubr.f32.mxu1 %v246_v53 }
 0x15e   :  { %2880 = vmatmul.mubr.f32.gmra.mrb[6].mxu1 %v2855_v52 }
 0x15f   :  { %v2858_v55 = vpop.f32.mrb[8].mxu0  ;;  %3283 = vmatprep.subr.bf16.mxu0 %v4056_v54 }
 0x160   :  { %v256_v56 = vpop.f32.mrb[9].mxu0  ;;  %3285 = vmatpush3.bf16.msra.mxu0 %v4056_v54 }
 0x161   :  { %v4060_v57 = vpack.c.bf16 %v2858_v55, %v256_v56  ;;  %2882 = vmatprep.mubr.f32.mxu1 %v256_v56 }
 0x162   :  { %2883 = vmatmul.mubr.f32.gmra.mrb[8].mxu1 %v2858_v55 }
 0x163   :  { %v2861_v58 = vpop.f32.mrb[10].mxu0  ;;  %3254 = vmatpush3.bf16.xpose.msra.mxu1 %v4050_v51  ;;  %3287 = vmatprep.subr.bf16.mxu0 %v4060_v57 }
 0x164   :  { %v266_v59 = vpop.f32.mrb[11].mxu0  ;;  %3289 = vmatpush3.bf16.msra.mxu0 %v4060_v57  ;;  %3255 = vmatprep.subr.bf16.mxu1 %v4976_v41 }
 0x165   :  { %v4066_v60 = vpack.c.bf16 %v2861_v58, %v266_v59  ;;  %2885 = vmatprep.mubr.f32.mxu1 %v266_v59  ;;  %v4124_v59 = vld [vmem:[#allocation2] sm:$0xff] }
 0x166   :  { %2886 = vmatmul.mubr.f32.gmra.mrb[10].mxu1 %v2861_v58 }
 0x167   :  { %v2864_v61 = vpop.f32.mrb[12].mxu0  ;;  %3291 = vmatprep.subr.bf16.mxu0 %v4066_v60 }
 0x168   :  { %v276_v62 = vpop.f32.mrb[13].mxu0  ;;  %3293 = vmatpush3.bf16.msra.mxu0 %v4066_v60 }
 0x169   :  { %v4070_v63 = vpack.c.bf16 %v2864_v61, %v276_v62  ;;  %2888 = vmatprep.mubr.f32.mxu1 %v276_v62 }
 0x16a   :  { %2889 = vmatmul.mubr.f32.gmra.mrb[12].mxu1 %v2864_v61 }
 0x16b   :  { %v2867_v0 = vpop.f32.mrb[14].mxu0  ;;  %3257 = vmatpush3.bf16.xpose.msra.mxu1 %v4056_v54  ;;  %3295 = vmatprep.subr.bf16.mxu0 %v4070_v63 }
 0x16c   :  { %v286_v1 = vpop.f32.mrb[15].mxu0  ;;  %3297 = vmatpush3.bf16.msra.mxu0 %v4070_v63  ;;  %3258 = vmatprep.subr.bf16.mxu1 %v4976_v41 }
 0x16d   :  { %v4076_v2 = vpack.c.bf16 %v2867_v0, %v286_v1  ;;  %2891 = vmatprep.mubr.f32.mxu1 %v286_v1 }
 0x16e   :  { %2892 = vmatmul.mubr.f32.gmra.mrb[14].mxu1 %v2867_v0 }
 0x16f   :  { %3299 = vmatprep.subr.bf16.mxu0 %v4076_v2  ;;  %2926 = vmatprep.mubr.msk.f32.mxu1 %vm3896_vm0, %v4974_v3  ;;  %v4223_v3 = vld [vmem:[#allocation2 + $0x78] sm:$0xff] }
 0x170   :  { %3301 = vmatpush3.bf16.msra.mxu0 %v4076_v2 }
 0x171   :  { %3303 = vmatprep.subr.bf16.mxu0 %v4040_v45 }
 0x173   :  { %3260 = vmatpush3.bf16.xpose.msra.mxu1 %v4060_v57 }
 0x174   :  { %3261 = vmatprep.subr.bf16.mxu1 %v4976_v41 }
 0x17b   :  { %3263 = vmatpush3.bf16.xpose.msra.mxu1 %v4066_v60 }
 0x17c   :  { %3264 = vmatprep.subr.bf16.mxu1 %v4976_v41 }
 0x183   :  { %3266 = vmatpush3.bf16.xpose.msra.mxu1 %v4070_v63 }
 0x184   :  { %3267 = vmatprep.subr.bf16.mxu1 %v4976_v41 }
 0x18b   :  { %3269 = vmatpush3.bf16.xpose.msra.mxu1 %v4076_v2 }
 0x192   :  { %2927 = vmatmul.mubr.f32.vlgmr.msra.gmra.mrb[16].mxu1 %v441_v4 }
 0x225   :  { %v2872_v5 = vpop.f32.mrb[0].mxu1 }
 0x226   :  { %977 = vperm.xlu1 %3435, %v2872_v5   ;;  %v362_v6 = vpop.f32.mrb[1].mxu1 }
 0x227   :  { %973 = vperm.xlu0 %3436, %v362_v6  }
 0x229   :  { %v2875_v7 = vpop.f32.mrb[2].mxu1 }
 0x22a   :  { %3437 = vset.pattern.permute.xlu1 %v3898_v8  ;;  %v372_v9 = vpop.f32.mrb[3].mxu1 }
 0x22b   :  { %985 = vperm.xlu0 %3436, %v2875_v7   ;;  %531 = vperm.xlu1 %3437, %v2875_v7  }
 0x22d   :  { %v2878_v10 = vpop.f32.mrb[4].mxu1 }
 0x22e   :  { %v382_v11 = vpop.f32.mrb[5].mxu1 }
 0x22f   :  { %526 = vperm.xlu1 %3437, %v372_v9   ;;  %993 = vperm.xlu0 %3436, %v2878_v10  }
 0x231   :  { %v2881_v12 = vpop.f32.mrb[6].mxu1 }
 0x232   :  { %v392_v13 = vpop.f32.mrb[7].mxu1 }
 0x233   :  { %541 = vperm.xlu1 %3437, %v2878_v10   ;;  %1001 = vperm.xlu0 %3436, %v2881_v12  }
 0x235   :  { %v2884_v14 = vpop.f32.mrb[8].mxu1 }
 0x236   :  { %v402_v15 = vpop.f32.mrb[9].mxu1 }
 0x237   :  { %551 = vperm.xlu1 %3437, %v2881_v12   ;;  %1009 = vperm.xlu0 %3436, %v2884_v14  }
 0x239   :  { %v2887_v16 = vpop.f32.mrb[10].mxu1 }
 0x23a   :  { %v412_v17 = vpop.f32.mrb[11].mxu1 }
 0x23b   :  { %561 = vperm.xlu1 %3437, %v2884_v14   ;;  %1017 = vperm.xlu0 %3436, %v2887_v16  }
 0x23d   :  { %v2890_v18 = vpop.f32.mrb[12].mxu1 }
 0x23e   :  { %v422_v19 = vpop.f32.mrb[13].mxu1 }
 0x23f   :  { %571 = vperm.xlu1 %3437, %v2887_v16   ;;  %1025 = vperm.xlu0 %3436, %v2890_v18  }
 0x241   :  { %v2893_v20 = vpop.f32.mrb[14].mxu1 }
 0x242   :  { %v432_v21 = vpop.f32.mrb[15].mxu1 }
 0x243   :  { %3439 = vset.pattern.permute.xlu0 %v3898_v8  ;;  %581 = vperm.xlu1 %3437, %v2890_v18  }
 0x244   :  { %516 = vperm.xlu0 %3439, %v362_v6  }
 0x247   :  { %591 = vperm.xlu1 %3437, %v2893_v20  }
 0x248   :  { %521 = vperm.xlu0 %3439, %v2872_v5   ;;  %v4130_v5 = vld [vmem:[#allocation2 + $0x18] sm:$0xff] }
 0x24b   :  { %3438 = vset.pattern.permute.xlu1 %v3895_v42 }
 0x24c   :  { %536 = vperm.xlu0 %3439, %v382_v11   ;;  %981 = vperm.xlu1 %3438, %v372_v9  }
 0x250   :  { %546 = vperm.xlu0 %3439, %v392_v13   ;;  %989 = vperm.xlu1 %3438, %v382_v11   ;;  %v4135_v11 = vld [vmem:[#allocation2 + $0x8] sm:$0xff] }
 0x254   :  { %556 = vperm.xlu0 %3439, %v402_v15   ;;  %997 = vperm.xlu1 %3438, %v392_v13  }
 0x258   :  { %566 = vperm.xlu0 %3439, %v412_v17   ;;  %1005 = vperm.xlu1 %3438, %v402_v15  }
 0x25c   :  { %576 = vperm.xlu0 %3439, %v422_v19   ;;  %1013 = vperm.xlu1 %3438, %v412_v17   ;;  %v4143_v17 = vld [vmem:[#allocation2 + $0x10] sm:$0xff] }
 0x260   :  { %1021 = vperm.xlu1 %3438, %v422_v19   ;;  %586 = vperm.xlu0 %3439, %v432_v21  }
 0x264   :  { %1029 = vperm.xlu1 %3438, %v432_v21   ;;  %3440 = vset.pattern.permute.xlu0 %v3895_v42 }
 0x265   :  { %1033 = vperm.xlu0 %3440, %v2893_v20   ;;  %v4092_v22 = vpop.f32.mrb[16].mxu1 }
 0x266   :  { %v2928_v23 = vpop.f32.mrb[17].mxu1  ;;  %v4115_v38 = vrot.slane %v4092_v22, %v4973_v35  ;;  %v4221_v35 = vld [vmem:[#allocation2 + $0x60] sm:$0xff] }
 0x268   :  { %3442 = vset.pattern.permute.xlu1 %v3898_v8 }
 0x269   :  { %3441 = vset.pattern.permute.xlu0 %v3898_v8 }
 0x2a5   :  { %v4094_v24 = vpop.permute.xlu1 %977 }
 0x2a6   :  { %v4096_v25 = vpop.permute.xlu0 %973 }
 0x2aa   :  { %v4098_v26 = vpop.permute.xlu0 %985  ;;  %v532_v27 = vpop.permute.xlu1 %531 }
 0x2ab   :  { %v601_v42 = vadd.f32 %v4115_v38, %v532_v27 }
 0x2ad   :  { %v617_v46 = vmul.f32 0.2, %v601_v42 }
 0x2ae   :  { %v527_v28 = vpop.permute.xlu1 %526  ;;  %v4100_v29 = vpop.permute.xlu0 %993 }
 0x2af   :  { %v600_v47 = vadd.f32 %v4115_v38, %v527_v28  ;;  %v633_v61 = vmax.f32 %v601_v42, %v617_v46  ;;  %v4157_v46 = vld [vmem:[#allocation2 + $0x20] sm:$0xff] }
 0x2b1   :  { %v616_v58 = vmul.f32 0.2, %v600_v47  ;;  %v4138_v12 = vadd.f32 %v633_v61, %v4130_v5 }
 0x2b2   :  { %v4102_v30 = vpop.permute.xlu0 %1001  ;;  %v542_v32 = vpop.permute.xlu1 %541 }
 0x2b3   :  { %v603_v50 = vadd.f32 %v4115_v38, %v542_v32  ;;  %v632_v13 = vmax.f32 %v600_v47, %v616_v58  ;;  %v4152_v32 = vld [vmem:[#allocation2 + $0x28] sm:$0xff] }
 0x2b5   :  { %v619_v62 = vmul.f32 0.2, %v603_v50  ;;  %v4150_v28 = vadd.f32 %v632_v13, %v4143_v17 }
 0x2b6   :  { %v4104_v33 = vpop.permute.xlu0 %1009  ;;  %v552_v36 = vpop.permute.xlu1 %551 }
 0x2b7   :  { %v605_v0 = vadd.f32 %v4115_v38, %v552_v36  ;;  %v635_v18 = vmax.f32 %v603_v50, %v619_v62 }
 0x2b9   :  { %v621_v14 = vmul.f32 0.2, %v605_v0 }
 0x2ba   :  { %v4110_v37 = vpop.permute.xlu0 %1017  ;;  %v562_v40 = vpop.permute.xlu1 %561 }
 0x2bb   :  { %v607_v10 = vadd.f32 %v4115_v38, %v562_v40  ;;  %v4155_v40 = vadd.f32 %v635_v18, %v4152_v32 }
 0x2bd   :  { %v623_v21 = vmul.f32 0.2, %v607_v10 }
 0x2be   :  { %v4117_v39 = vpop.permute.xlu0 %1025  ;;  %v572_v49 = vpop.permute.xlu1 %571 }
 0x2bf   :  { %v609_v23 = vadd.f32 %v4115_v38, %v572_v49  ;;  %v1038_v49 = vsub.s32 1, %v4107_v34 }
 0x2c1   :  { %v625_v50 = vmul.f32 0.2, %v609_v23 }
 0x2c2   :  { %v582_v6 = vpop.permute.xlu1 %581 }
 0x2c3   :  { %v517_v43 = vpop.permute.xlu0 %516 }
 0x2c4   :  { %v598_v44 = vadd.f32 %v4115_v38, %v517_v43  ;;  %v637_v43 = vmax.f32 %v605_v0, %v621_v14  ;;  %v641_v14 = vmax.f32 %v609_v23, %v625_v50 }
 0x2c6   :  { %v614_v52 = vmul.f32 0.2, %v598_v44  ;;  %v592_v27 = vpop.permute.xlu1 %591 }
 0x2c7   :  { %v522_v53 = vpop.permute.xlu0 %521 }
 0x2c8   :  { %v599_v55 = vadd.f32 %v4115_v38, %v522_v53  ;;  %v630_v56 = vmax.f32 %v598_v44, %v614_v52  ;;  %v611_v52 = vadd.f32 %v4115_v38, %v582_v6  ;;  %v4164_v53 = vld [vmem:[#allocation2 + $0x38] sm:$0xff]  ;;  %v4177_v6 = vld [vmem:[#allocation2 + $0x48] sm:$0xff] }
 0x2c9   :  { %v4170_v61 = vadd.f32 %v637_v43, %v4164_v53 }
 0x2ca   :  { %v615_v1 = vmul.f32 0.2, %v599_v55  ;;  %v4128_v4 = vadd.f32 %v630_v56, %v4124_v59 }
 0x2cb   :  { %v537_v7 = vpop.permute.xlu0 %536  ;;  %v982_v0 = vpop.permute.xlu1 %981 }
 0x2cc   :  { %v602_v8 = vadd.f32 %v4115_v38, %v537_v7  ;;  %662 = vmax.xlane.f32.xlu1 %v4128_v4  ;;  %v631_v9 = vmax.f32 %v599_v55, %v615_v1  ;;  %v639_v55 = vmax.f32 %v607_v10, %v623_v21  ;;  %v4172_v7 = vld [vmem:[#allocation2 + $0x30] sm:$0xff]  ;;  %v627_v10 = vmul.f32 0.2, %v611_v52 }
 0x2ce   :  { %v618_v15 = vmul.f32 0.2, %v602_v8  ;;  %v4141_v16 = vadd.f32 %v631_v9, %v4135_v11  ;;  %v4180_v9 = vrot.slane %v4092_v22, %v1038_v49  ;;  %v4183_v13 = vadd.f32 %v639_v55, %v4177_v6  ;;  %v4194_v22 = vld [vmem:[#allocation2 + $0x58] sm:$0xff] }
 0x2cf   :  { %v547_v19 = vpop.permute.xlu0 %546  ;;  %v4199_v43 = vadd.f32 %v641_v14, %v4194_v22 }
 0x2d0   :  { %v604_v20 = vadd.f32 %v4115_v38, %v547_v19  ;;  %664 = vmax.xlane.f32.xlu0 %v4141_v16  ;;  %668 = vmax.xlane.f32.xlu1 %v4138_v12  ;;  %v634_v42 = vmax.f32 %v602_v8, %v618_v15  ;;  %v613_v15 = vadd.f32 %v4115_v38, %v592_v27  ;;  %v990_v27 = vpop.permute.xlu1 %989 }
 0x2d1   :  { %v1041_v23 = vadd.f32 %v4180_v9, %v4094_v24  ;;  %v4209_v24 = vld [vmem:[#allocation2 + $0x68] sm:$0xff] }
 0x2d2   :  { %v620_v36 = vmul.f32 0.2, %v604_v20  ;;  %v4167_v58 = vadd.f32 %v634_v42, %v4157_v46 }
 0x2d3   :  { %v557_v44 = vpop.permute.xlu0 %556  ;;  %v1057_v14 = vmul.f32 0.2, %v1041_v23 }
 0x2d4   :  { %v606_v47 = vadd.f32 %v4115_v38, %v557_v44  ;;  %666 = vmax.xlane.f32.xlu0 %v4150_v28  ;;  %672 = vmax.xlane.f32.xlu1 %v4155_v40  ;;  %v636_v62 = vmax.f32 %v604_v20, %v620_v36  ;;  %v4189_v36 = vld [vmem:[#allocation2 + $0x40] sm:$0xff]  ;;  %v643_v44 = vmax.f32 %v611_v52, %v627_v10 }
 0x2d5   :  { %v1040_v52 = vadd.f32 %v4180_v9, %v4096_v25  ;;  %v1043_v10 = vadd.f32 %v4180_v9, %v4098_v26  ;;  %v1073_v31 = vmax.f32 %v1041_v23, %v1057_v14  ;;  %v1047_v14 = vadd.f32 %v4180_v9, %v4102_v30 }
 0x2d6   :  { %v622_v56 = vmul.f32 0.2, %v606_v47  ;;  %v4187_v19 = vadd.f32 %v636_v62, %v4172_v7  ;;  %v4204_v62 = vld [vmem:[#allocation2 + $0x50] sm:$0xff] }
 0x2d7   :  { %v567_v1 = vpop.permute.xlu0 %566  ;;  %v1056_v25 = vmul.f32 0.2, %v1040_v52  ;;  %v1059_v26 = vmul.f32 0.2, %v1043_v10 }
 0x2d8   :  { %v608_v8 = vadd.f32 %v4115_v38, %v567_v1  ;;  %670 = vmax.xlane.f32.xlu0 %v4167_v58  ;;  %676 = vmax.xlane.f32.xlu1 %v4170_v61  ;;  %v638_v20 = vmax.f32 %v606_v47, %v622_v56  ;;  %v629_v47 = vmul.f32 0.2, %v613_v15 }
 0x2d9   :  { %v1072_v23 = vmax.f32 %v1040_v52, %v1056_v25  ;;  %v1063_v52 = vmul.f32 0.2, %v1047_v14 }
 0x2da   :  { %v624_v18 = vmul.f32 0.2, %v608_v8  ;;  %v4202_v50 = vadd.f32 %v638_v20, %v4189_v36 }
 0x2db   :  { %v577_v21 = vpop.permute.xlu0 %576 }
 0x2dc   :  { %v610_v42 = vadd.f32 %v4115_v38, %v577_v21  ;;  %674 = vmax.xlane.f32.xlu0 %v4187_v19  ;;  %680 = vmax.xlane.f32.xlu1 %v4183_v13  ;;  %v640_v55 = vmax.f32 %v608_v8, %v624_v18  ;;  %v4216_v8 = vadd.f32 %v643_v44, %v4209_v24 }
 0x2dd   :  { %v645_v21 = vmax.f32 %v613_v15, %v629_v47  ;;  %v1045_v44 = vadd.f32 %v4180_v9, %v4100_v29  ;;  %v4241_v29 = vadd.f32 %v1073_v31, %v4135_v11  ;;  %v4254_v31 = vadd.f32 %v1072_v23, %v4124_v59 }
 0x2de   :  { %v626_v49 = vmul.f32 0.2, %v610_v42  ;;  %v4219_v20 = vadd.f32 %v640_v55, %v4204_v62  ;;  %v1042_v55 = vadd.f32 %v4180_v9, %v982_v0  ;;  %v1075_v0 = vmax.f32 %v1043_v10, %v1059_v26 }
 0x2df   :  { %v587_v56 = vpop.permute.xlu0 %586  ;;  %v4234_v15 = vadd.f32 %v645_v21, %v4223_v3  ;;  %v1061_v41 = vmul.f32 0.2, %v1045_v44  ;;  %v1044_v21 = vadd.f32 %v4180_v9, %v990_v27 }
 0x2e0   :  { %v612_v1 = vadd.f32 %v4115_v38, %v587_v56  ;;  %678 = vmax.xlane.f32.xlu0 %v4202_v50  ;;  %684 = vmax.xlane.f32.xlu1 %v4199_v43  ;;  %v642_v38 = vmax.f32 %v610_v42, %v626_v49  ;;  %v998_v56 = vpop.permute.xlu1 %997  ;;  %v4236_v49 = vld [vmem:[#allocation2 + $0x70] sm:$0xff]  ;;  %v4257_v11 = vadd.f32 %v1075_v0, %v4130_v5 }
 0x2e1   :  { %v1077_v30 = vmax.f32 %v1045_v44, %v1061_v41  ;;  %v1060_v10 = vmul.f32 0.2, %v1044_v21  ;;  %v1046_v27 = vadd.f32 %v4180_v9, %v998_v56  ;;  %v1053_v0 = vadd.f32 %v4180_v9, %v4117_v39 }
 0x2e2   :  { %v628_v18 = vmul.f32 0.2, %v612_v1  ;;  %v4231_v42 = vadd.f32 %v642_v38, %v4221_v35  ;;  %v1058_v38 = vmul.f32 0.2, %v1042_v55 }
 0x2e3   :  { %v4266_v5 = vadd.f32 %v1077_v30, %v4152_v32  ;;  %v1062_v41 = vmul.f32 0.2, %v1046_v27  ;;  %v1076_v56 = vmax.f32 %v1044_v21, %v1060_v10 }
 0x2e4   :  { %682 = vmax.xlane.f32.xlu0 %v4219_v20  ;;  %688 = vmax.xlane.f32.xlu1 %v4216_v8  ;;  %v644_v47 = vmax.f32 %v612_v1, %v628_v18  ;;  %v1006_v34 = vpop.permute.xlu1 %1005  ;;  %v1049_v18 = vadd.f32 %v4180_v9, %v4104_v33  ;;  %v1074_v25 = vmax.f32 %v1042_v55, %v1058_v38  ;;  %v1034_v21 = vpop.permute.xlu0 %1033 }
 0x2e5   :  { %v1051_v33 = vadd.f32 %v4180_v9, %v4110_v37  ;;  %v1048_v59 = vadd.f32 %v4180_v9, %v1006_v34  ;;  %v1079_v55 = vmax.f32 %v1047_v14, %v1063_v52  ;;  %v4277_v30 = vadd.f32 %v1076_v56, %v4157_v46 }
 0x2e6   :  { %v4247_v1 = vadd.f32 %v644_v47, %v4236_v49  ;;  %v1065_v47 = vmul.f32 0.2, %v1049_v18  ;;  %v4269_v44 = vadd.f32 %v1074_v25, %v4143_v17  ;;  %v1078_v14 = vmax.f32 %v1046_v27, %v1062_v41 }
 0x2e7   :  { %v1067_v23 = vmul.f32 0.2, %v1051_v33  ;;  %v1064_v37 = vmul.f32 0.2, %v1048_v59  ;;  %v4280_v17 = vadd.f32 %v1079_v55, %v4164_v53  ;;  %v1069_v52 = vmul.f32 0.2, %v1053_v0 }
 0x2e8   :  { %686 = vmax.xlane.f32.xlu0 %v4231_v42  ;;  %692 = vmax.xlane.f32.xlu1 %v4234_v15  ;;  %v1014_v26 = vpop.permute.xlu1 %1013  ;;  %v1081_v34 = vmax.f32 %v1049_v18, %v1065_v47  ;;  %v1055_v46 = vadd.f32 %v4180_v9, %v1034_v21  ;;  %v4290_v53 = vadd.f32 %v1078_v14, %v4172_v7 }
 0x2e9   :  { %v1050_v32 = vadd.f32 %v4180_v9, %v1014_v26  ;;  %v1080_v10 = vmax.f32 %v1048_v59, %v1064_v37  ;;  %v1083_v18 = vmax.f32 %v1051_v33, %v1067_v23  ;;  %v1085_v33 = vmax.f32 %v1053_v0, %v1069_v52 }
 0x2ea   :  { %v4285_v39 = vadd.f32 %v1081_v34, %v4177_v6  ;;  %v1071_v56 = vmul.f32 0.2, %v1055_v46 }
 0x2eb   :  { %v1066_v25 = vmul.f32 0.2, %v1050_v32  ;;  %v4295_v47 = vadd.f32 %v1080_v10, %v4189_v36  ;;  %v4298_v6 = vadd.f32 %v1083_v18, %v4194_v22  ;;  %v4304_v7 = vadd.f32 %v1085_v33, %v4209_v24 }
 0x2ec   :  { %690 = vmax.xlane.f32.xlu0 %v4247_v1  ;;  %1106 = vmax.xlane.f32.xlu1 %v4241_v29  ;;  %v1022_v38 = vpop.permute.xlu1 %1021  ;;  %v1087_v22 = vmax.f32 %v1055_v46, %v1071_v56 }
 0x2ed   :  { %v1052_v26 = vadd.f32 %v4180_v9, %v1022_v38  ;;  %v1082_v55 = vmax.f32 %v1050_v32, %v1066_v25 }
 0x2ee   :  { %v4315_v0 = vadd.f32 %v1087_v22, %v4223_v3 }
 0x2ef   :  { %v1068_v59 = vmul.f32 0.2, %v1052_v26  ;;  %v4307_v36 = vadd.f32 %v1082_v55, %v4204_v62 }
 0x2f0   :  { %1104 = vmax.xlane.f32.xlu0 %v4254_v31  ;;  %1110 = vmax.xlane.f32.xlu1 %v4257_v11  ;;  %v1030_v27 = vpop.permute.xlu1 %1029 }
 0x2f1   :  { %v1054_v41 = vadd.f32 %v4180_v9, %v1030_v27  ;;  %v1084_v37 = vmax.f32 %v1052_v26, %v1068_v59 }
 0x2f3   :  { %v1070_v23 = vmul.f32 0.2, %v1054_v41  ;;  %v4312_v9 = vadd.f32 %v1084_v37, %v4221_v35 }
 0x2f4   :  { %1108 = vmax.xlane.f32.xlu0 %v4269_v44  ;;  %1114 = vmax.xlane.f32.xlu1 %v4266_v5 }
 0x2f5   :  { %v1086_v38 = vmax.f32 %v1054_v41, %v1070_v23 }
 0x2f7   :  { %v4320_v62 = vadd.f32 %v1086_v38, %v4236_v49 }
 0x2f8   :  { %1112 = vmax.xlane.f32.xlu0 %v4277_v30  ;;  %1118 = vmax.xlane.f32.xlu1 %v4280_v17 }
 0x2fc   :  { %1116 = vmax.xlane.f32.xlu0 %v4290_v53  ;;  %1122 = vmax.xlane.f32.xlu1 %v4285_v39 }
 0x300   :  { %1120 = vmax.xlane.f32.xlu0 %v4295_v47  ;;  %1126 = vmax.xlane.f32.xlu1 %v4298_v6 }
 0x304   :  { %1124 = vmax.xlane.f32.xlu0 %v4307_v36  ;;  %1130 = vmax.xlane.f32.xlu1 %v4304_v7 }
 0x308   :  { %1128 = vmax.xlane.f32.xlu0 %v4312_v9  ;;  %1134 = vmax.xlane.f32.xlu1 %v4315_v0 }
 0x30c   :  { %1132 = vmax.xlane.f32.xlu0 %v4320_v62 }
 0x359   :  { %v663_v24 = vpop.xlane.xlu1 %662 }
 0x35a   :  { %v694_v34 = vsub.f32 %v4128_v4, %v663_v24 }
 0x35c   :  { %v710_v32 = vmul.f32 1.442695, %v694_v34 }
 0x35d   :  { %v665_v14 = vpop.xlane.xlu0 %664  ;;  %v669_v35 = vpop.xlane.xlu1 %668 }
 0x35e   :  { %3443 = vpow2.f32 %v710_v32  ;;  %v695_v3 = vsub.f32 %v4141_v16, %v665_v14  ;;  %v697_v52 = vsub.f32 %v4138_v12, %v669_v35 }
 0x360   :  { %v712_v21 = vmul.f32 1.442695, %v695_v3  ;;  %v716_v25 = vmul.f32 1.442695, %v697_v52 }
 0x361   :  { %v667_v10 = vpop.xlane.xlu0 %666  ;;  %v673_v18 = vpop.xlane.xlu1 %672 }
 0x362   :  { %3445 = vpow2.f32 %v712_v21  ;;  %v696_v49 = vsub.f32 %v4150_v28, %v667_v10  ;;  %v699_v46 = vsub.f32 %v4155_v40, %v673_v18 }
 0x364   :  { %v714_v26 = vmul.f32 1.442695, %v696_v49  ;;  %v720_v16 = vmul.f32 1.442695, %v699_v46 }
 0x365   :  { %v671_v27 = vpop.xlane.xlu0 %670  ;;  %v677_v4 = vpop.xlane.xlu1 %676 }
 0x366   :  { %3447 = vpow2.f32 %v714_v26  ;;  %v698_v33 = vsub.f32 %v4167_v58, %v671_v27  ;;  %v701_v12 = vsub.f32 %v4170_v61, %v677_v4 }
 0x367   :  { %3449 = vpow2.f32 %v716_v25 }
 0x368   :  { %v3444_v59 = vpop.eup %3443  ;;  %v718_v41 = vmul.f32 1.442695, %v698_v33  ;;  %v724_v40 = vmul.f32 1.442695, %v701_v12 }
 0x369   :  { %v675_v56 = vpop.xlane.xlu0 %674  ;;  %2961 = vmatprep.mubr.f32.mxu0 %v3444_v59  ;;  %v681_v55 = vpop.xlane.xlu1 %680 }
 0x36a   :  { %3451 = vpow2.f32 %v718_v41  ;;  %v700_v28 = vsub.f32 %v4187_v19, %v675_v56  ;;  %v703_v22 = vsub.f32 %v4183_v13, %v681_v55 }
 0x36b   :  { %3453 = vpow2.f32 %v720_v16 }
 0x36c   :  { %v3446_v23 = vpop.eup %3445  ;;  %v722_v37 = vmul.f32 1.442695, %v700_v28  ;;  %v728_v19 = vmul.f32 1.442695, %v703_v22 }
 0x36d   :  { %v679_v38 = vpop.xlane.xlu0 %678  ;;  %744 = vadd.xlane.f32.xlu0 %v3446_v23  ;;  %2962 = vmatmul.mubr.f32.vlgmr.msra.gmra.mrb[16].mxu0 %v3446_v23  ;;  %v685_v58 = vpop.xlane.xlu1 %684 }
 0x36e   :  { %3455 = vpow2.f32 %v722_v37  ;;  %v702_v24 = vsub.f32 %v4202_v50, %v679_v38  ;;  %3305 = vmatpush3.bf16.msra.mxu0 %v4040_v45  ;;  %v705_v32 = vsub.f32 %v4199_v43, %v685_v58 }
 0x36f   :  { %3307 = vmatprep.subr.bf16.mxu0 %v4046_v48  ;;  %3457 = vpow2.f32 %v724_v40 }
 0x370   :  { %v3448_v61 = vpop.eup %3447  ;;  %v726_v34 = vmul.f32 1.442695, %v702_v24  ;;  %v732_v50 = vmul.f32 1.442695, %v705_v32 }
 0x371   :  { %v683_v14 = vpop.xlane.xlu0 %682  ;;  %742 = vadd.xlane.f32.xlu0 %v3444_v59  ;;  %2964 = vmatprep.mubr.f32.mxu0 %v3448_v61  ;;  %v689_v13 = vpop.xlane.xlu1 %688 }
 0x372   :  { %v3450_v35 = vpop.eup %3449  ;;  %3459 = vpow2.f32 %v726_v34  ;;  %v704_v3 = vsub.f32 %v4219_v20, %v683_v14  ;;  %3309 = vmatpush3.bf16.msra.mxu0 %v4046_v48  ;;  %v707_v52 = vsub.f32 %v4216_v8, %v689_v13 }
 0x373   :  { %2965 = vmatmul.mubr.f32.gmra.mrb[18].mxu0 %v3450_v35  ;;  %3311 = vmatprep.subr.bf16.mxu0 %v4050_v51  ;;  %3461 = vpow2.f32 %v728_v19 }
 0x374   :  { %v3452_v45 = vpop.eup %3451  ;;  %v730_v21 = vmul.f32 1.442695, %v704_v3  ;;  %v736_v20 = vmul.f32 1.442695, %v707_v52 }
 0x375   :  { %v687_v43 = vpop.xlane.xlu0 %686  ;;  %748 = vadd.xlane.f32.xlu0 %v3450_v35  ;;  %2967 = vmatprep.mubr.f32.mxu0 %v3452_v45  ;;  %v693_v10 = vpop.xlane.xlu1 %692 }
 0x376   :  { %v3454_v18 = vpop.eup %3453  ;;  %3463 = vpow2.f32 %v730_v21  ;;  %v706_v49 = vsub.f32 %v4231_v42, %v687_v43  ;;  %3313 = vmatpush3.bf16.msra.mxu0 %v4050_v51  ;;  %v709_v8 = vsub.f32 %v4234_v15, %v693_v10 }
 0x377   :  { %2968 = vmatmul.mubr.f32.gmra.mrb[20].mxu0 %v3454_v18  ;;  %3315 = vmatprep.subr.bf16.mxu0 %v4056_v54  ;;  %3465 = vpow2.f32 %v732_v50 }
 0x378   :  { %v4343_v48 = vpop.eup %3455  ;;  %v734_v25 = vmul.f32 1.442695, %v706_v49  ;;  %v740_v15 = vmul.f32 1.442695, %v709_v8 }
 0x379   :  { %v691_v26 = vpop.xlane.xlu0 %690  ;;  %746 = vadd.xlane.f32.xlu0 %v3448_v61  ;;  %2970 = vmatprep.mubr.f32.mxu0 %v4343_v48  ;;  %v1107_v46 = vpop.xlane.xlu1 %1106 }
 0x37a   :  { %v3458_v27 = vpop.eup %3457  ;;  %3467 = vpow2.f32 %v734_v25  ;;  %v708_v42 = vsub.f32 %v4247_v1, %v691_v26  ;;  %3317 = vmatpush3.bf16.msra.mxu0 %v4056_v54  ;;  %v1137_v51 = vsub.f32 %v4241_v29, %v1107_v46 }
 0x37b   :  { %2971 = vmatmul.mubr.f32.gmra.mrb[22].mxu0 %v3458_v27  ;;  %3319 = vmatprep.subr.bf16.mxu0 %v4060_v57  ;;  %3469 = vpow2.f32 %v736_v20 }
 0x37c   :  { %v4351_v4 = vpop.eup %3459  ;;  %v738_v33 = vmul.f32 1.442695, %v708_v42  ;;  %v1154_v59 = vmul.f32 1.442695, %v1137_v51 }
 0x37d   :  { %v1105_v16 = vpop.xlane.xlu0 %1104  ;;  %752 = vadd.xlane.f32.xlu0 %v3454_v18  ;;  %2973 = vmatprep.mubr.f32.mxu0 %v4351_v4  ;;  %v1111_v41 = vpop.xlane.xlu1 %1110 }
 0x37e   :  { %v3462_v12 = vpop.eup %3461  ;;  %3471 = vpow2.f32 %v738_v33  ;;  %v1136_v54 = vsub.f32 %v4254_v31, %v1105_v16  ;;  %3321 = vmatpush3.bf16.msra.mxu0 %v4060_v57  ;;  %v1139_v29 = vsub.f32 %v4257_v11, %v1111_v41 }
 0x37f   :  { %3473 = vpow2.f32 %v1154_v59  ;;  %2974 = vmatmul.mubr.f32.gmra.mrb[24].mxu0 %v3462_v12  ;;  %3323 = vmatprep.subr.bf16.mxu0 %v4066_v60 }
 0x380   :  { %v4358_v1 = vpop.eup %3463  ;;  %3475 = vpow2.f32 %v740_v15  ;;  %v1152_v56 = vmul.f32 1.442695, %v1136_v54  ;;  %v1158_v31 = vmul.f32 1.442695, %v1139_v29  ;;  %v1533_v29 = vld [vmem:[#allocation10] sm:$0xff] }
 0x381   :  { %v1109_v55 = vpop.xlane.xlu0 %1108  ;;  %750 = vadd.xlane.f32.xlu0 %v3452_v45  ;;  %2976 = vmatprep.mubr.f32.mxu0 %v4358_v1  ;;  %v1115_v28 = vpop.xlane.xlu1 %1114 }
 0x382   :  { %v4361_v23 = vpop.eup %3465  ;;  %3477 = vpow2.f32 %v1152_v56  ;;  %v1138_v57 = vsub.f32 %v4269_v44, %v1109_v55  ;;  %3325 = vmatpush3.bf16.msra.mxu0 %v4066_v60  ;;  %v1141_v37 = vsub.f32 %v4266_v5, %v1115_v28  ;;  %v1535_v55 = vld [vmem:[#allocation10 + $0x10] sm:$0xff]  ;;  %v1536_v28 = vld [vmem:[#allocation10 + $0x18] sm:$0xff] }
 0x383   :  { %2977 = vmatmul.mubr.f32.gmra.mrb[26].mxu0 %v4361_v23  ;;  %3327 = vmatprep.subr.bf16.mxu0 %v4070_v63 }
 0x384   :  { %v4367_v11 = vpop.eup %3467  ;;  %v1156_v40 = vmul.f32 1.442695, %v1138_v57  ;;  %v1162_v5 = vmul.f32 1.442695, %v1141_v37  ;;  %v1537_v57 = vld [vmem:[#allocation10 + $0x20] sm:$0xff]  ;;  %v1540_v37 = vld [vmem:[#allocation10 + $0x38] sm:$0xff] }
 0x385   :  { %v1113_v22 = vpop.xlane.xlu0 %1112  ;;  %756 = vadd.xlane.f32.xlu0 %v3458_v27  ;;  %2979 = vmatprep.mubr.f32.mxu0 %v4367_v11  ;;  %v1119_v38 = vpop.xlane.xlu1 %1118 }
 0x386   :  { %v4371_v58 = vpop.eup %3469  ;;  %3479 = vpow2.f32 %v1156_v40  ;;  %v1140_v60 = vsub.f32 %v4277_v30, %v1113_v22  ;;  %3329 = vmatpush3.bf16.msra.mxu0 %v4070_v63  ;;  %v1143_v61 = vsub.f32 %v4280_v17, %v1119_v38  ;;  %v1539_v40 = vld [vmem:[#allocation10 + $0x30] sm:$0xff]  ;;  %v1541_v38 = vld [vmem:[#allocation10 + $0x40] sm:$0xff] }
 0x387   :  { %3481 = vpow2.f32 %v1158_v31  ;;  %2980 = vmatmul.mubr.f32.gmra.mrb[28].mxu0 %v4371_v58  ;;  %3331 = vmatprep.subr.bf16.mxu0 %v4076_v2  ;;  %v1538_v31 = vld [vmem:[#allocation10 + $0x28] sm:$0xff]  ;;  %v3346_v22 = vpack.c.bf16 %v1540_v37, %v1539_v40 }
 0x388   :  { %v4377_v44 = vpop.eup %3471  ;;  %v1160_v24 = vmul.f32 1.442695, %v1140_v60  ;;  %v1166_v17 = vmul.f32 1.442695, %v1143_v61  ;;  %v1545_v61 = vld [vmem:[#allocation10 + $0x60] sm:$0xff] }
 0x389   :  { %v3474_v19 = vpop.eup %3473  ;;  %v1117_v34 = vpop.xlane.xlu0 %1116  ;;  %754 = vadd.xlane.f32.xlu0 %v4343_v48  ;;  %2982 = vmatprep.mubr.f32.mxu0 %v4377_v44 }
 0x38a   :  { %v1123_v30 = vpop.xlane.xlu1 %1122  ;;  %v4382_v32 = vpop.eup %3475  ;;  %3483 = vpow2.f32 %v1160_v24  ;;  %v1142_v63 = vsub.f32 %v4290_v53, %v1117_v34  ;;  %3333 = vmatpush3.bf16.msra.mxu0 %v4076_v2  ;;  %1186 = vadd.xlane.f32.xlu1 %v3474_v19 }
 0x38b   :  { %2983 = vmatmul.mubr.f32.gmra.mrb[30].mxu0 %v4382_v32  ;;  %3485 = vpow2.f32 %v1162_v5  ;;  %v1145_v35 = vsub.f32 %v4285_v39, %v1123_v30  ;;  %v1544_v5 = vld [vmem:[#allocation10 + $0x58] sm:$0xff]  ;;  %v1547_v30 = vld [vmem:[#allocation10 + $0x70] sm:$0xff] }
 0x38c   :  { %v3478_v14 = vpop.eup %3477  ;;  %v1164_v13 = vmul.f32 1.442695, %v1142_v63 }
 0x38d   :  { %v1121_v3 = vpop.xlane.xlu0 %1120  ;;  %760 = vadd.xlane.f32.xlu0 %v3462_v12  ;;  %3017 = vmatprep.mubr.f32.mxu0 %v3478_v14  ;;  %v1170_v2 = vmul.f32 1.442695, %v1145_v35 }
 0x38e   :  { %v1127_v45 = vpop.xlane.xlu1 %1126  ;;  %3487 = vpow2.f32 %v1164_v13  ;;  %v1144_v50 = vsub.f32 %v4295_v47, %v1121_v3  ;;  %1184 = vadd.xlane.f32.xlu1 %v3478_v14  ;;  %v4980_v14 = vmov 0.0|0.0  }
 0x38f   :  { %3018 = vmatmul.mubr.f32.vlgmr.msra.gmra.mrb[32].mxu0 %v3474_v19  ;;  %3489 = vpow2.f32 %v1166_v17  ;;  %v1147_v52 = vsub.f32 %v4298_v6, %v1127_v45  ;;  %v1546_v19 = vld [vmem:[#allocation10 + $0x68] sm:$0xff] }
 0x390   :  { %v3480_v53 = vpop.eup %3479  ;;  %v1168_v21 = vmul.f32 1.442695, %v1144_v50  ;;  %v3358_v34 = vpack.c.bf16 %v1546_v19, %v1545_v61 }
 0x391   :  { %v3482_v43 = vpop.eup %3481  ;;  %v1125_v10 = vpop.xlane.xlu0 %1124  ;;  %758 = vadd.xlane.f32.xlu0 %v4351_v4  ;;  %3020 = vmatprep.mubr.f32.mxu0 %v3480_v53  ;;  %v1174_v49 = vmul.f32 1.442695, %v1147_v52 }
 0x392   :  { %v1131_v39 = vpop.xlane.xlu1 %1130  ;;  %3491 = vpow2.f32 %v1168_v21  ;;  %v1146_v18 = vsub.f32 %v4307_v36, %v1125_v10  ;;  %1190 = vadd.xlane.f32.xlu1 %v3482_v43 }
 0x393   :  { %3021 = vmatmul.mubr.f32.gmra.mrb[34].mxu0 %v3482_v43  ;;  %3493 = vpow2.f32 %v1170_v2  ;;  %v1149_v20 = vsub.f32 %v4304_v7, %v1131_v39 }
 0x394   :  { %v3484_v47 = vpop.eup %3483  ;;  %v1172_v48 = vmul.f32 1.442695, %v1146_v18 }
 0x395   :  { %v1129_v25 = vpop.xlane.xlu0 %1128  ;;  %764 = vadd.xlane.f32.xlu0 %v4361_v23  ;;  %3023 = vmatprep.mubr.f32.mxu0 %v3484_v47  ;;  %v3486_v8 = vpop.eup %3485  ;;  %v1178_v46 = vmul.f32 1.442695, %v1149_v20  ;;  %v3338_v23 = vpack.c.bf16 %v1536_v28, %v1535_v55 }
 0x396   :  { %v1135_v6 = vpop.xlane.xlu1 %1134  ;;  %3495 = vpow2.f32 %v1172_v48  ;;  %v1148_v26 = vsub.f32 %v4312_v9, %v1129_v25  ;;  %1188 = vadd.xlane.f32.xlu1 %v3480_v53  ;;  %v1694_v53 = vld [vmem:[%s4969_s7] sm:$0xff] }
 0x397   :  { %3024 = vmatmul.mubr.f32.gmra.mrb[36].mxu0 %v3486_v8  ;;  %3497 = vpow2.f32 %v1174_v49  ;;  %v1151_v42 = vsub.f32 %v4315_v0, %v1135_v6  ;;  %3097 = vmatprep.subr.mxu0 %v1694_v53 }
 0x398   :  { %v3488_v36 = vpop.eup %3487  ;;  %v1176_v27 = vmul.f32 1.442695, %v1148_v26  ;;  %3098 = vmatpush3.xpose.msra.mxu0 %v1694_v53 }
 0x399   :  { %v1133_v51 = vpop.xlane.xlu0 %1132  ;;  %762 = vadd.xlane.f32.xlu0 %v4358_v1  ;;  %3026 = vmatprep.mubr.f32.mxu0 %v3488_v36  ;;  %v3490_v7 = vpop.eup %3489  ;;  %v1182_v9 = vmul.f32 1.442695, %v1151_v42  ;;  %v1534_v1 = vld [vmem:[#allocation10 + $0x8] sm:$0xff] }
 0x39a   :  { %3499 = vpow2.f32 %v1176_v27  ;;  %v1150_v4 = vsub.f32 %v4320_v62, %v1133_v51  ;;  %1194 = vadd.xlane.f32.xlu1 %v3486_v8  ;;  %v3334_v56 = vpack.c.bf16 %v1534_v1, %v1533_v29 }
 0x39b   :  { %3027 = vmatmul.mubr.f32.gmra.mrb[38].mxu0 %v3490_v7  ;;  %3501 = vpow2.f32 %v1178_v46 }
 0x39c   :  { %v3492_v15 = vpop.eup %3491  ;;  %v1180_v33 = vmul.f32 1.442695, %v1150_v4  ;;  %3335 = vmatprep.subr.bf16.mxu1 %v3334_v56 }
 0x39d   :  { %768 = vadd.xlane.f32.xlu0 %v4371_v58  ;;  %3029 = vmatprep.mubr.f32.mxu0 %v3492_v15  ;;  %v3494_v59 = vpop.eup %3493  ;;  %v1542_v58 = vld [vmem:[#allocation10 + $0x48] sm:$0xff] }
 0x39e   :  { %3503 = vpow2.f32 %v1180_v33  ;;  %1192 = vadd.xlane.f32.xlu1 %v3484_v47  ;;  %3337 = vmatpush3.bf16.msra.mxu1 %v3334_v56  ;;  %v3350_v60 = vpack.c.bf16 %v1542_v58, %v1541_v38 }
 0x39f   :  { %3030 = vmatmul.mubr.f32.gmra.mrb[40].mxu0 %v3494_v59  ;;  %3505 = vpow2.f32 %v1182_v9  ;;  %3339 = vmatprep.subr.bf16.mxu1 %v3338_v23 }
 0x3a0   :  { %v3496_v0 = vpop.eup %3495 }
 0x3a1   :  { %766 = vadd.xlane.f32.xlu0 %v4367_v11  ;;  %3032 = vmatprep.mubr.f32.mxu0 %v3496_v0  ;;  %v3498_v16 = vpop.eup %3497  ;;  %v3342_v11 = vpack.c.bf16 %v1538_v31, %v1537_v57 }
 0x3a2   :  { %1198 = vadd.xlane.f32.xlu1 %v3490_v7  ;;  %3341 = vmatpush3.bf16.msra.mxu1 %v3338_v23 }
 0x3a3   :  { %3033 = vmatmul.mubr.f32.gmra.mrb[42].mxu0 %v3498_v16  ;;  %3343 = vmatprep.subr.bf16.mxu1 %v3342_v11 }
 0x3a4   :  { %v3500_v62 = vpop.eup %3499 }
 0x3a5   :  { %770 = vadd.xlane.f32.xlu0 %v4377_v44  ;;  %3035 = vmatprep.mubr.f32.mxu0 %v3500_v62  ;;  %v3502_v41 = vpop.eup %3501  ;;  %v1543_v44 = vld [vmem:[#allocation10 + $0x50] sm:$0xff] }
 0x3a6   :  { %1196 = vadd.xlane.f32.xlu1 %v3488_v36  ;;  %3345 = vmatpush3.bf16.msra.mxu1 %v3342_v11  ;;  %v3354_v24 = vpack.c.bf16 %v1544_v5, %v1543_v44 }
 0x3a7   :  { %3036 = vmatmul.mubr.f32.gmra.mrb[44].mxu0 %v3502_v41  ;;  %3347 = vmatprep.subr.bf16.mxu1 %v3346_v22 }
 0x3a8   :  { %v3504_v12 = vpop.eup %3503 }
 0x3a9   :  { %772 = vadd.xlane.f32.xlu0 %v4382_v32  ;;  %3038 = vmatprep.mubr.f32.mxu0 %v3504_v12  ;;  %v3506_v54 = vpop.eup %3505  ;;  %v1548_v32 = vld [vmem:[#allocation10 + $0x78] sm:$0xff] }
 0x3aa   :  { %1202 = vadd.xlane.f32.xlu1 %v3494_v59  ;;  %3349 = vmatpush3.bf16.msra.mxu1 %v3346_v22  ;;  %v3362_v63 = vpack.c.bf16 %v1548_v32, %v1547_v30 }
 0x3ab   :  { %3039 = vmatmul.mubr.f32.gmra.mrb[46].mxu0 %v3506_v54  ;;  %3351 = vmatprep.subr.bf16.mxu1 %v3350_v60 }
 0x3ae   :  { %1200 = vadd.xlane.f32.xlu1 %v3492_v15  ;;  %3353 = vmatpush3.bf16.msra.mxu1 %v3350_v60  ;;  %v4981_v60 = vlaneseq }
 0x3af   :  { %3355 = vmatprep.subr.bf16.mxu1 %v3354_v24 }
 0x3b0   :  { %v4435_v44 = vand.u32 127, %v4981_v60 }
 0x3b2   :  { %1206 = vadd.xlane.f32.xlu1 %v3498_v16  ;;  %3357 = vmatpush3.bf16.msra.mxu1 %v3354_v24  ;;  %vm1361_vm1 = vcmp.ge.s32.totalorder %v4435_v44, 16  ;;  %vm1362_vm2 = vcmp.lt.s32.totalorder %v4435_v44, 32  ;;  %vm920_vm3 = vcmp.lt.s32.totalorder %v4435_v44, 16 }
 0x3b3   :  { %3359 = vmatprep.subr.bf16.mxu1 %v3358_v34  ;;  %vm4454_vm4 = vmand %vm1361_vm1, %vm1362_vm2 }
 0x3b6   :  { %1204 = vadd.xlane.f32.xlu1 %v3496_v0  ;;  %3361 = vmatpush3.bf16.msra.mxu1 %v3358_v34 }
 0x3b7   :  { %3363 = vmatprep.subr.bf16.mxu1 %v3362_v63 }
 0x3ba   :  { %1210 = vadd.xlane.f32.xlu1 %v3502_v41  ;;  %3365 = vmatpush3.bf16.msra.mxu1 %v3362_v63 }
 0x3bb   :  { %3366 = vmatprep.subr.bf16.mxu1 %v4980_v14 }
 0x3be   :  { %1208 = vadd.xlane.f32.xlu1 %v3500_v62 }
 0x3c2   :  { %1212 = vadd.xlane.f32.xlu1 %v3504_v12 }
 0x3c6   :  { %1214 = vadd.xlane.f32.xlu1 %v3506_v54 }
 0x3fa   :  { %v745_v17 = vpop.xlane.xlu0 %744 }
 0x3fb   :  { %3507 = vrcp.f32 %v745_v17 }
 0x3fe   :  { %v743_v13 = vpop.xlane.xlu0 %742 }
 0x3ff   :  { %3509 = vrcp.f32 %v743_v13 }
 0x402   :  { %v749_v35 = vpop.xlane.xlu0 %748 }
 0x403   :  { %3511 = vrcp.f32 %v749_v35 }
 0x405   :  { %v3508_v0 = vpop.eup %3507 }
 0x406   :  { %v747_v3 = vpop.xlane.xlu0 %746 }
 0x407   :  { %3513 = vrcp.f32 %v747_v3 }
 0x409   :  { %v3510_v62 = vpop.eup %3509 }
 0x40a   :  { %v753_v45 = vpop.xlane.xlu0 %752 }
 0x40b   :  { %3515 = vrcp.f32 %v753_v45  ;;  %v941_v45 = vsel %vm920_vm3, %v3508_v0, 0.0 }
 0x40d   :  { %v3512_v12 = vpop.eup %3511 }
 0x40e   :  { %v751_v21 = vpop.xlane.xlu0 %750  ;;  %v943_v53 = vsel %vm920_vm3, %v3512_v12, 0.0 }
 0x40f   :  { %3517 = vrcp.f32 %v751_v21 }
 0x411   :  { %v3514_v54 = vpop.eup %3513 }
 0x412   :  { %v757_v43 = vpop.xlane.xlu0 %756 }
 0x413   :  { %3519 = vrcp.f32 %v757_v43 }
 0x415   :  { %v3516_v29 = vpop.eup %3515 }
 0x416   :  { %v755_v18 = vpop.xlane.xlu0 %754 }
 0x417   :  { %v1187_v50 = vpop.xlane.xlu1 %1186  ;;  %3521 = vrcp.f32 %v755_v18 }
 0x418   :  { %3523 = vrcp.f32 %v1187_v50  ;;  %v940_v50 = vsel %vm920_vm3, %v3510_v62, 0.0 }
 0x419   :  { %v3518_v55 = vpop.eup %3517 }
 0x41a   :  { %v761_v49 = vpop.xlane.xlu0 %760 }
 0x41b   :  { %v1185_v2 = vpop.xlane.xlu1 %1184  ;;  %3525 = vrcp.f32 %v761_v49 }
 0x41c   :  { %3527 = vrcp.f32 %v1185_v2  ;;  %v942_v2 = vsel %vm920_vm3, %v3514_v54, 0.0 }
 0x41d   :  { %v3520_v57 = vpop.eup %3519 }
 0x41e   :  { %v759_v20 = vpop.xlane.xlu0 %758  ;;  %v4478_v18 = vsel %vm920_vm3, %v3520_v57, 0.0 }
 0x41f   :  { %v1191_v52 = vpop.xlane.xlu1 %1190  ;;  %3529 = vrcp.f32 %v759_v20 }
 0x420   :  { %3531 = vrcp.f32 %v1191_v52 }
 0x421   :  { %v3522_v31 = vpop.eup %3521 }
 0x422   :  { %v765_v6 = vpop.xlane.xlu0 %764  ;;  %v3524_v11 = vpop.eup %3523  ;;  %v4482_v49 = vsel %vm920_vm3, %v3522_v31, 0.0 }
 0x423   :  { %v1189_v10 = vpop.xlane.xlu1 %1188  ;;  %3533 = vrcp.f32 %v765_v6  ;;  %v1383_v20 = vsel %vm4454_vm4, %v3524_v11, 0.0 }
 0x424   :  { %3535 = vrcp.f32 %v1189_v10  ;;  %v945_v10 = vsel %vm920_vm3, %v3516_v29, 0.0 }
 0x425   :  { %v3526_v37 = vpop.eup %3525 }
 0x426   :  { %v763_v26 = vpop.xlane.xlu0 %762  ;;  %v3528_v38 = vpop.eup %3527 }
 0x427   :  { %v1195_v39 = vpop.xlane.xlu1 %1194  ;;  %3537 = vrcp.f32 %v763_v26 }
 0x428   :  { %3539 = vrcp.f32 %v1195_v39  ;;  %v4474_v39 = vsel %vm920_vm3, %v3518_v55, 0.0 }
 0x429   :  { %v3530_v5 = vpop.eup %3529 }
 0x42a   :  { %v769_v42 = vpop.xlane.xlu0 %768  ;;  %v4437_v61 = vpop.eup %3531 }
 0x42b   :  { %v1193_v47 = vpop.xlane.xlu1 %1192  ;;  %3541 = vrcp.f32 %v769_v42  ;;  %v1385_v42 = vsel %vm4454_vm4, %v4437_v61, 0.0 }
 0x42c   :  { %3543 = vrcp.f32 %v1193_v47 }
 0x42d   :  { %v3534_v34 = vpop.eup %3533 }
 0x42e   :  { %v767_v33 = vpop.xlane.xlu0 %766  ;;  %v4445_v32 = vpop.eup %3535  ;;  %v4500_v26 = vsel %vm920_vm3, %v3534_v34, 0.0 }
 0x42f   :  { %v1199_v48 = vpop.xlane.xlu1 %1198  ;;  %3545 = vrcp.f32 %v767_v33  ;;  %v1384_v12 = vsel %vm4454_vm4, %v4445_v32, 0.0 }
 0x430   :  { %3547 = vrcp.f32 %v1199_v48  ;;  %v4486_v48 = vsel %vm920_vm3, %v3526_v37, 0.0 }
 0x431   :  { %v3538_v63 = vpop.eup %3537 }
 0x432   :  { %v771_v1 = vpop.xlane.xlu0 %770  ;;  %v4450_v17 = vpop.eup %3539 }
 0x433   :  { %v1197_v25 = vpop.xlane.xlu1 %1196  ;;  %3549 = vrcp.f32 %v771_v1  ;;  %v4519_v1 = vld [vmem:[%s4967_s5] ss:$0 sm:$0xff]  ;;  %v1387_v55 = vsel %vm4454_vm4, %v4450_v17, 0.0 }
 0x434   :  { %3551 = vrcp.f32 %v1197_v25  ;;  %v1382_v25 = vsel %vm4454_vm4, %v3528_v38, 0.0 }
 0x435   :  { %v3542_v3 = vpop.eup %3541 }
 0x436   :  { %v773_v58 = vpop.xlane.xlu0 %772  ;;  %v4468_v43 = vpop.eup %3543  ;;  %v4526_v31 = vsel %vm920_vm3, %v3542_v3, 0.0 }
 0x437   :  { %v4406_v8 = vpop.xlane.xlu1 %1202  ;;  %3553 = vrcp.f32 %v773_v58  ;;  %v1386_v37 = vsel %vm4454_vm4, %v4468_v43, 0.0 }
 0x438   :  { %3555 = vrcp.f32 %v4406_v8  ;;  %v4496_v8 = vsel %vm920_vm3, %v3530_v5, 0.0 }
 0x439   :  { %v3546_v47 = vpop.eup %3545 }
 0x43a   :  { %v4492_v6 = vpop.eup %3547 }
 0x43b   :  { %v4410_v46 = vpop.xlane.xlu1 %1200 }
 0x43c   :  { %3557 = vrcp.f32 %v4410_v46 }
 0x43f   :  { %v1207_v7 = vpop.xlane.xlu1 %1206 }
 0x440   :  { %v4408_v36 = vpop.f32.mrb[16].mxu0  ;;  %3559 = vrcp.f32 %v1207_v7  ;;  %v3550_v7 = vpop.eup %3549 }
 0x441   :  { %v4412_v27 = vpop.f32.mrb[17].mxu0  ;;  %v957_v33 = vmul.f32 %v4408_v36, %v941_v45  ;;  %v4513_v54 = vpop.eup %3551  ;;  %v4539_v58 = vsel %vm920_vm3, %v3550_v7, 0.0 }
 0x442   :  { %v956_v29 = vmul.f32 %v940_v50, %v4412_v27  ;;  %v4530_v27 = vsel %vm920_vm3, %v3546_v47, 0.0  ;;  %v1388_v3 = vsel %vm4454_vm4, %v4513_v54, 0.0 }
 0x443   :  { %v1205_v59 = vpop.xlane.xlu1 %1204 }
 0x444   :  { %3561 = vrcp.f32 %v1205_v59  ;;  %v4508_v59 = vsel %vm920_vm3, %v3538_v63, 0.0 }
 0x446   :  { %v4414_v51 = vpop.f32.mrb[18].mxu0 }
 0x447   :  { %v4416_v4 = vpop.f32.mrb[19].mxu0  ;;  %v1211_v28 = vpop.xlane.xlu1 %1210  ;;  %v959_v34 = vmul.f32 %v4414_v51, %v943_v53 }
 0x448   :  { %3563 = vrcp.f32 %v1211_v28  ;;  %v3554_v28 = vpop.eup %3553  ;;  %v958_v50 = vmul.f32 %v942_v2, %v4416_v4 }
 0x449   :  { %v4535_v38 = vpop.eup %3555  ;;  %v955_v51 = vsel %vm920_vm3, %v3554_v28, 0.0 }
 0x44a   :  { %v4418_v15 = vpop.f32.mrb[20].mxu0  ;;  %v4544_v61 = vpop.eup %3557 }
 0x44b   :  { %v4420_v9 = vpop.f32.mrb[21].mxu0  ;;  %v1209_v24 = vpop.xlane.xlu1 %1208  ;;  %v1390_v44 = vsel %vm4454_vm4, %v4544_v61, 0.0 }
 0x44c   :  { %3565 = vrcp.f32 %v1209_v24  ;;  %v1389_v24 = vsel %vm4454_vm4, %v4492_v6, 0.0  ;;  %v4553_v45 = vpop.eup %3559  ;;  %v961_v6 = vmul.f32 %v4418_v15, %v945_v10  ;;  %v960_v15 = vmul.f32 %v4474_v39, %v4420_v9 }
 0x44e   :  { %v4422_v16 = vpop.f32.mrb[22].mxu0 }
 0x44f   :  { %v4424_v41 = vpop.f32.mrb[23].mxu0  ;;  %v1213_v21 = vpop.xlane.xlu1 %1212  ;;  %v963_v54 = vmul.f32 %v4422_v16, %v4478_v18 }
 0x450   :  { %3567 = vrcp.f32 %v1213_v21  ;;  %v962_v9 = vmul.f32 %v4482_v49, %v4424_v41 }
 0x452   :  { %v4426_v56 = vpop.f32.mrb[24].mxu0 }
 0x453   :  { %v4428_v23 = vpop.f32.mrb[25].mxu0  ;;  %v1215_v57 = vpop.xlane.xlu1 %1214  ;;  %v965_v39 = vmul.f32 %v4426_v56, %v4486_v48 }
 0x454   :  { %3569 = vrcp.f32 %v1215_v57  ;;  %v964_v41 = vmul.f32 %v4496_v8, %v4428_v23 }
 0x456   :  { %v4430_v40 = vpop.f32.mrb[26].mxu0 }
 0x457   :  { %v4432_v22 = vpop.f32.mrb[27].mxu0  ;;  %v967_v48 = vmul.f32 %v4430_v40, %v4500_v26 }
 0x458   :  { %v966_v23 = vmul.f32 %v4508_v59, %v4432_v22 }
 0x45a   :  { %v4439_v19 = vpop.f32.mrb[28].mxu0 }
 0x45b   :  { %v4441_v30 = vpop.f32.mrb[29].mxu0  ;;  %v969_v8 = vmul.f32 %v4439_v19, %v4526_v31 }
 0x45c   :  { %v968_v22 = vmul.f32 %v4530_v27, %v4441_v30 }
 0x45e   :  { %v4452_v13 = vpop.f32.mrb[30].mxu0 }
 0x45f   :  { %v4466_v52 = vpop.f32.mrb[31].mxu0 }
 0x460   :  { %v4644_v30 = vmul.f32 %v4539_v58, %v4466_v52 }
 0x462   :  { %v3019_v46 = vpop.f32.mrb[32].mxu0 }
 0x463   :  { %v1399_v0 = vmul.f32 %v3019_v46, %v1383_v20  ;;  %v1282_v62 = vpop.f32.mrb[33].mxu0  ;;  %v1391_v20 = vsel %vm4454_vm4, %v4535_v38, 0.0 }
 0x464   :  { %v1398_v36 = vmul.f32 %v1382_v25, %v1282_v62  ;;  %v4565_v25 = vpop.eup %3561 }
 0x465   :  { %v1415_v11 = vadd.f32 %v1399_v0, %v957_v33  ;;  %v1393_v0 = vsel %vm4454_vm4, %v4553_v45, 0.0  ;;  %v4578_v62 = vpop.eup %3563 }
 0x466   :  { %v1414_v60 = vadd.f32 %v1398_v36, %v956_v29  ;;  %v3022_v5 = vpop.f32.mrb[34].mxu0  ;;  %v4591_v28 = vpop.eup %3565 }
 0x467   :  { %v4548_v32 = vadd.f32 %v4519_v1, %v1415_v11  ;;  %v1401_v63 = vmul.f32 %v3022_v5, %v1385_v42  ;;  %v1292_v17 = vpop.f32.mrb[35].mxu0  ;;  %v4604_v5 = vpop.eup %3567 }
 0x468   :  { %v4557_v21 = vadd.f32 %v4519_v1, %v1414_v60  ;;  %v1400_v43 = vmul.f32 %v1384_v12, %v1292_v17  ;;  %v1395_v60 = vsel %vm4454_vm4, %v4578_v62, 0.0 }
 0x469   :  { %v1471_v53 = vmul.f32 1.442695, %v4548_v32  ;;  %v1417_v47 = vadd.f32 %v1401_v63, %v959_v34  ;;  %v1394_v34 = vsel %vm4454_vm4, %v4591_v28, 0.0  ;;  %v4617_v63 = vpop.eup %3569  ;;  %vm1454_vm6 = vcmp.gt.f32.partialorder %v4548_v32, 0.0 }
 0x46a   :  { %v1469_v4 = vmul.f32 1.442695, %v4557_v21  ;;  %v1416_v2 = vadd.f32 %v1400_v43, %v958_v50  ;;  %v3025_v46 = vpop.f32.mrb[36].mxu0  ;;  %v1396_v43 = vsel %vm4454_vm4, %v4604_v5, 0.0  ;;  %vm1453_vm5 = vcmp.gt.f32.partialorder %v4557_v21, 0.0 }
 0x46b   :  { %3571 = vpow2.f32 %v1471_v53  ;;  %v4573_v42 = vadd.f32 %v4519_v1, %v1417_v47  ;;  %v1403_v7 = vmul.f32 %v3025_v46, %v1387_v55  ;;  %v1302_v33 = vpop.f32.mrb[37].mxu0  ;;  %v1392_v55 = vsel %vm4454_vm4, %v4565_v25, 0.0 }
 0x46c   :  { %v4583_v10 = vadd.f32 %v4519_v1, %v1416_v2  ;;  %v1402_v12 = vmul.f32 %v1386_v37, %v1302_v33  ;;  %3573 = vpow2.f32 %v1469_v4  ;;  %v4636_v53 = vmul.f32 %v4452_v13, %v955_v51 }
 0x46d   :  { %v1475_v29 = vmul.f32 1.442695, %v4573_v42  ;;  %v1419_v36 = vadd.f32 %v1403_v7, %v961_v6  ;;  %v1397_v25 = vsel %vm4454_vm4, %v4617_v63, 0.0  ;;  %vm1456_vm8 = vcmp.gt.f32.partialorder %v4573_v42, 0.0 }
 0x46e   :  { %v1473_v57 = vmul.f32 1.442695, %v4583_v10  ;;  %v1418_v11 = vadd.f32 %v1402_v12, %v960_v15  ;;  %v3028_v37 = vpop.f32.mrb[38].mxu0  ;;  %vm1455_vm7 = vcmp.gt.f32.partialorder %v4583_v10, 0.0 }
 0x46f   :  { %v4599_v16 = vadd.f32 %v4519_v1, %v1419_v36  ;;  %v1405_v18 = vmul.f32 %v3028_v37, %v1389_v24  ;;  %v1312_v38 = vpop.f32.mrb[39].mxu0  ;;  %3575 = vpow2.f32 %v1475_v29 }
 0x470   :  { %v4609_v56 = vadd.f32 %v4519_v1, %v1418_v11  ;;  %v1404_v49 = vmul.f32 %v1388_v3, %v1312_v38  ;;  %3577 = vpow2.f32 %v1473_v57 }
 0x471   :  { %v1479_v24 = vmul.f32 1.442695, %v4599_v16  ;;  %v1421_v61 = vadd.f32 %v1405_v18, %v963_v54  ;;  %vm1458_vm10 = vcmp.gt.f32.partialorder %v4599_v16, 0.0 }
 0x472   :  { %v1477_v17 = vmul.f32 1.442695, %v4609_v56  ;;  %v1420_v3 = vadd.f32 %v1404_v49, %v962_v9  ;;  %v3031_v45 = vpop.f32.mrb[40].mxu0  ;;  %vm1457_vm9 = vcmp.gt.f32.partialorder %v4609_v56, 0.0 }
 0x473   :  { %v4625_v40 = vadd.f32 %v4519_v1, %v1421_v61  ;;  %v1407_v26 = vmul.f32 %v3031_v45, %v1391_v20  ;;  %v1322_v50 = vpop.f32.mrb[41].mxu0  ;;  %3579 = vpow2.f32 %v1479_v24 }
 0x474   :  { %v4633_v59 = vadd.f32 %v4519_v1, %v1420_v3  ;;  %v1406_v19 = vmul.f32 %v1390_v44, %v1322_v50  ;;  %3581 = vpow2.f32 %v1477_v17 }
 0x475   :  { %v3572_v31 = vpop.eup %3571  ;;  %v1483_v47 = vmul.f32 1.442695, %v4625_v40  ;;  %v1423_v20 = vadd.f32 %v1407_v26, %v965_v39  ;;  %vm1460_vm12 = vcmp.gt.f32.partialorder %v4625_v40, 0.0 }
 0x476   :  { %v3574_v6 = vpop.eup %3573  ;;  %v1481_v27 = vmul.f32 1.442695, %v4633_v59  ;;  %v1422_v4 = vadd.f32 %v1406_v19, %v964_v41  ;;  %v3034_v2 = vpop.f32.mrb[42].mxu0  ;;  %v2568_v46 = vadd.f32 -1.0, %v3572_v31  ;;  %vm1459_vm11 = vcmp.gt.f32.partialorder %v4633_v59, 0.0 }
 0x477   :  { %v4648_v13 = vadd.f32 %v4519_v1, %v1423_v20  ;;  %v1409_v51 = vmul.f32 %v3034_v2, %v1393_v0  ;;  %v1332_v44 = vpop.f32.mrb[43].mxu0  ;;  %v2567_v7 = vadd.f32 -1.0, %v3574_v6  ;;  %3583 = vpow2.f32 %v1483_v47 }
 0x478   :  { %v4651_v33 = vadd.f32 %v4519_v1, %v1422_v4  ;;  %v1408_v62 = vmul.f32 %v1392_v55, %v1332_v44  ;;  %3585 = vpow2.f32 %v1481_v27  ;;  %v1518_v28 = vsel %vm1454_vm6, %v4548_v32, %v2568_v46 }
 0x479   :  { %v3576_v52 = vpop.eup %3575  ;;  %v1487_v58 = vmul.f32 1.442695, %v4648_v13  ;;  %v1425_v15 = vadd.f32 %v1409_v51, %v967_v48  ;;  %v1517_v12 = vsel %vm1453_vm5, %v4557_v21, %v2567_v7  ;;  %vm1462_vm14 = vcmp.gt.f32.partialorder %v4648_v13, 0.0 }
 0x47a   :  { %v3578_v54 = vpop.eup %3577  ;;  %v1485_v0 = vmul.f32 1.442695, %v4651_v33  ;;  %v1424_v29 = vadd.f32 %v1408_v62, %v966_v23  ;;  %v3037_v36 = vpop.f32.mrb[44].mxu0  ;;  %3073 = vmatprep.mubr.f32.mxu1 %v1517_v12  ;;  %v2570_v55 = vadd.f32 -1.0, %v3576_v52  ;;  %vm1461_vm13 = vcmp.gt.f32.partialorder %v4651_v33, 0.0 }
 0x47b   :  { %v4660_v9 = vadd.f32 %v4519_v1, %v1425_v15  ;;  %v1411_v39 = vmul.f32 %v3037_v36, %v1395_v60  ;;  %v1342_v57 = vpop.f32.mrb[45].mxu0  ;;  %3074 = vmatmul.mubr.f32.vlgmr.msra.gmra.mrb[18].mxu1 %v1518_v28  ;;  %v2569_v11 = vadd.f32 -1.0, %v3578_v54  ;;  %3587 = vpow2.f32 %v1487_v58 }
 0x47c   :  { %v4663_v21 = vadd.f32 %v4519_v1, %v1424_v29  ;;  %v1410_v37 = vmul.f32 %v1394_v34, %v1342_v57  ;;  %3589 = vpow2.f32 %v1485_v0  ;;  %v1520_v61 = vsel %vm1456_vm8, %v4573_v42, %v2570_v55 }
 0x47d   :  { %v3580_v18 = vpop.eup %3579  ;;  %v1491_v38 = vmul.f32 1.442695, %v4660_v9  ;;  %v1427_v32 = vadd.f32 %v1411_v39, %v969_v8  ;;  %v1519_v41 = vsel %vm1455_vm7, %v4583_v10, %v2569_v11  ;;  %vm1464_vm1 = vcmp.gt.f32.partialorder %v4660_v9, 0.0 }
 0x47e   :  { %v3582_v60 = vpop.eup %3581  ;;  %v1489_v49 = vmul.f32 1.442695, %v4663_v21  ;;  %v1426_v48 = vadd.f32 %v1410_v37, %v968_v22  ;;  %v3040_v24 = vpop.f32.mrb[46].mxu0  ;;  %3076 = vmatprep.mubr.f32.mxu1 %v1519_v41  ;;  %v2572_v34 = vadd.f32 -1.0, %v3580_v18  ;;  %vm1463_vm15 = vcmp.gt.f32.partialorder %v4663_v21, 0.0 }
 0x47f   :  { %v4672_v63 = vadd.f32 %v4519_v1, %v1427_v32  ;;  %v1413_v23 = vmul.f32 %v3040_v24, %v1397_v25  ;;  %v1352_v17 = vpop.f32.mrb[47].mxu0  ;;  %3077 = vmatmul.mubr.f32.gmra.mrb[20].mxu1 %v1520_v61  ;;  %v2571_v8 = vadd.f32 -1.0, %v3582_v60  ;;  %3591 = vpow2.f32 %v1491_v38 }
 0x480   :  { %v1449_v10 = vadd.f32 %v4519_v1, %v1426_v48  ;;  %v1412_v3 = vmul.f32 %v1396_v43, %v1352_v17  ;;  %3593 = vpow2.f32 %v1489_v49  ;;  %v1522_v35 = vsel %vm1458_vm10, %v4599_v16, %v2572_v34 }
 0x481   :  { %v3584_v42 = vpop.eup %3583  ;;  %v1495_v45 = vmul.f32 1.442695, %v4672_v63  ;;  %v1429_v26 = vadd.f32 %v1413_v23, %v4636_v53  ;;  %v1521_v50 = vsel %vm1457_vm9, %v4609_v56, %v2571_v8  ;;  %vm1466_vm3 = vcmp.gt.f32.partialorder %v4672_v63, 0.0 }
 0x482   :  { %v3586_v22 = vpop.eup %3585  ;;  %v1493_v19 = vmul.f32 1.442695, %v1449_v10  ;;  %v1428_v31 = vadd.f32 %v1412_v3, %v4644_v30  ;;  %3079 = vmatprep.mubr.f32.mxu1 %v1521_v50  ;;  %v2574_v5 = vadd.f32 -1.0, %v3584_v42  ;;  %vm1465_vm2 = vcmp.gt.f32.partialorder %v1449_v10, 0.0 }
 0x483   :  { %v1452_v43 = vadd.f32 %v4519_v1, %v1429_v26  ;;  %3080 = vmatmul.mubr.f32.gmra.mrb[22].mxu1 %v1522_v35  ;;  %v2573_v47 = vadd.f32 -1.0, %v3586_v22  ;;  %3595 = vpow2.f32 %v1495_v45  ;;  %v4984_v55 = vmov 0.0   ;;  %v1840_v26 = vld [vmem:[%s4970_s8] sm:$0xff] }
 0x484   :  { %v1451_v20 = vadd.f32 %v4519_v1, %v1428_v31  ;;  %3597 = vpow2.f32 %v1493_v19  ;;  %v1524_v16 = vsel %vm1460_vm12, %v4625_v40, %v2574_v5 }
 0x485   :  { %v3588_v56 = vpop.eup %3587  ;;  %v1499_v53 = vmul.f32 1.442695, %v1452_v43  ;;  %v1523_v25 = vsel %vm1459_vm11, %v4633_v59, %v2573_v47  ;;  %vm1468_vm5 = vcmp.gt.f32.partialorder %v1452_v43, 0.0 }
 0x486   :  { %v3590_v6 = vpop.eup %3589  ;;  %v1497_v30 = vmul.f32 1.442695, %v1451_v20  ;;  %3082 = vmatprep.mubr.f32.mxu1 %v1523_v25  ;;  %v2576_v27 = vadd.f32 -1.0, %v3588_v56  ;;  %vm1467_vm4 = vcmp.gt.f32.partialorder %v1451_v20, 0.0 }
 0x487   :  { %3083 = vmatmul.mubr.f32.gmra.mrb[24].mxu1 %v1524_v16  ;;  %v2575_v4 = vadd.f32 -1.0, %v3590_v6  ;;  %3599 = vpow2.f32 %v1499_v53 }
 0x488   :  { %3601 = vpow2.f32 %v1497_v30  ;;  %v1526_v46 = vsel %vm1462_vm14, %v4648_v13, %v2576_v27 }
 0x489   :  { %v3592_v1 = vpop.eup %3591  ;;  %v1525_v2 = vsel %vm1461_vm13, %v4651_v33, %v2575_v4 }
 0x48a   :  { %v3594_v59 = vpop.eup %3593  ;;  %3085 = vmatprep.mubr.f32.mxu1 %v1525_v2  ;;  %v2578_v51 = vadd.f32 -1.0, %v3592_v1  ;;  %v4985_v1 = vld [vmem:[#allocation16_spill] sm:$0xff] }
 0x48b   :  { %3086 = vmatmul.mubr.f32.gmra.mrb[26].mxu1 %v1526_v46  ;;  %v2577_v44 = vadd.f32 -1.0, %v3594_v59  ;;  %v4986_v2 = vsub.s32 0, %v4985_v1 }
 0x48c   :  { %v1528_v33 = vsel %vm1464_vm1, %v4660_v9, %v2578_v51 }
 0x48d   :  { %v3596_v40 = vpop.eup %3595  ;;  %v1527_v7 = vsel %vm1463_vm15, %v4663_v21, %v2577_v44 }
 0x48e   :  { %v3598_v62 = vpop.eup %3597  ;;  %3088 = vmatprep.mubr.f32.mxu1 %v1527_v7  ;;  %v2580_v52 = vadd.f32 -1.0, %v3596_v40 }
 0x48f   :  { %3089 = vmatmul.mubr.f32.gmra.mrb[28].mxu1 %v1528_v33  ;;  %v2579_v58 = vadd.f32 -1.0, %v3598_v62 }
 0x490   :  { %v1530_v54 = vsel %vm1466_vm3, %v4672_v63, %v2580_v52 }
 0x491   :  { %v3600_v15 = vpop.eup %3599  ;;  %v1529_v13 = vsel %vm1465_vm2, %v1449_v10, %v2579_v58 }
 0x492   :  { %v3602_v12 = vpop.eup %3601  ;;  %3091 = vmatprep.mubr.f32.mxu1 %v1529_v13  ;;  %v2582_v0 = vadd.f32 -1.0, %v3600_v15 }
 0x493   :  { %3092 = vmatmul.mubr.f32.gmra.mrb[30].mxu1 %v1530_v54  ;;  %v2581_v29 = vadd.f32 -1.0, %v3602_v12  ;;  %v3731_v12 = vld [vmem:[#allocation2 + $0x8] sm:$0xff] }
 0x494   :  { %v1532_v28 = vsel %vm1468_vm5, %v1452_v43, %v2582_v0 }
 0x495   :  { %v1531_v36 = vsel %vm1467_vm4, %v1451_v20, %v2581_v29  ;;  %v3732_v29 = vld [vmem:[#allocation2] sm:$0xff] }
 0x496   :  { %3094 = vmatprep.mubr.f32.mxu1 %v1531_v36 }
 0x497   :  { %3095 = vmatmul.mubr.f32.gmra.mrb[32].mxu1 %v1532_v28 }
 0x498   :  { %3155 = vmatprep.mubr.msk.f32.mxu1 %vm3896_vm0, %v4984_v55 }
 0x54e   :  { %v3075_v9 = vpop.f32.mrb[18].mxu1 }
 0x54f   :  { %v1615_v39 = vpop.f32.mrb[19].mxu1 }
 0x550   :  { %v3367_v57 = vpack.c.bf16 %v3075_v9, %v1615_v39  ;;  %3099 = vmatprep.mubr.f32.mxu0 %v1615_v39  ;;  %v3733_v39 = vld [vmem:[#allocation2 + $0x18] sm:$0xff] }
 0x551   :  { %3100 = vmatmul.mubr.f32.vlgmr.msra.gmra.mrb[48].mxu0 %v3075_v9 }
 0x552   :  { %v3078_v11 = vpop.f32.mrb[20].mxu1  ;;  %3368 = vmatpush3.bf16.xpose.msra.mxu1 %v3367_v57  ;;  %3391 = vmatprep.subr.bf16.mxu0 %v3367_v57 }
 0x553   :  { %v1625_v21 = vpop.f32.mrb[21].mxu1  ;;  %3393 = vmatpush3.bf16.msra.mxu0 %v3367_v57  ;;  %3369 = vmatprep.subr.bf16.mxu1 %v4980_v14 }
 0x554   :  { %v3370_v37 = vpack.c.bf16 %v3078_v11, %v1625_v21  ;;  %3102 = vmatprep.mubr.f32.mxu0 %v1625_v21 }
 0x555   :  { %3103 = vmatmul.mubr.f32.gmra.mrb[50].mxu0 %v3078_v11 }
 0x556   :  { %v3081_v18 = vpop.f32.mrb[22].mxu1  ;;  %3395 = vmatprep.subr.bf16.mxu0 %v3370_v37 }
 0x557   :  { %v1635_v38 = vpop.f32.mrb[23].mxu1  ;;  %3397 = vmatpush3.bf16.msra.mxu0 %v3370_v37 }
 0x558   :  { %v3373_v32 = vpack.c.bf16 %v3081_v18, %v1635_v38  ;;  %3105 = vmatprep.mubr.f32.mxu0 %v1635_v38  ;;  %v3734_v38 = vld [vmem:[#allocation2 + $0x10] sm:$0xff] }
 0x559   :  { %3106 = vmatmul.mubr.f32.gmra.mrb[52].mxu0 %v3081_v18 }
 0x55a   :  { %v3084_v41 = vpop.f32.mrb[24].mxu1  ;;  %3371 = vmatpush3.bf16.xpose.msra.mxu1 %v3370_v37  ;;  %3399 = vmatprep.subr.bf16.mxu0 %v3373_v32 }
 0x55b   :  { %v1645_v60 = vpop.f32.mrb[25].mxu1  ;;  %3401 = vmatpush3.bf16.msra.mxu0 %v3373_v32  ;;  %3372 = vmatprep.subr.bf16.mxu1 %v4980_v14 }
 0x55c   :  { %v3376_v49 = vpack.c.bf16 %v3084_v41, %v1645_v60  ;;  %3108 = vmatprep.mubr.f32.mxu0 %v1645_v60 }
 0x55d   :  { %3109 = vmatmul.mubr.f32.gmra.mrb[54].mxu0 %v3084_v41 }
 0x55e   :  { %v3087_v48 = vpop.f32.mrb[26].mxu1  ;;  %3403 = vmatprep.subr.bf16.mxu0 %v3376_v49 }
 0x55f   :  { %v1655_v24 = vpop.f32.mrb[27].mxu1  ;;  %3405 = vmatpush3.bf16.msra.mxu0 %v3376_v49 }
 0x560   :  { %v3379_v61 = vpack.c.bf16 %v3087_v48, %v1655_v24  ;;  %3111 = vmatprep.mubr.f32.mxu0 %v1655_v24 }
 0x561   :  { %3112 = vmatmul.mubr.f32.gmra.mrb[56].mxu0 %v3087_v48 }
 0x562   :  { %v3090_v34 = vpop.f32.mrb[28].mxu1  ;;  %3374 = vmatpush3.bf16.xpose.msra.mxu1 %v3373_v32  ;;  %3407 = vmatprep.subr.bf16.mxu0 %v3379_v61 }
 0x563   :  { %v1665_v63 = vpop.f32.mrb[29].mxu1  ;;  %3409 = vmatpush3.bf16.msra.mxu0 %v3379_v61  ;;  %3375 = vmatprep.subr.bf16.mxu1 %v4980_v14 }
 0x564   :  { %v3382_v23 = vpack.c.bf16 %v3090_v34, %v1665_v63  ;;  %3114 = vmatprep.mubr.f32.mxu0 %v1665_v63 }
 0x565   :  { %3115 = vmatmul.mubr.f32.gmra.mrb[58].mxu0 %v3090_v34  ;;  %v3735_v34 = vld [vmem:[#allocation2 + $0x28] sm:$0xff] }
 0x566   :  { %v3093_v17 = vpop.f32.mrb[30].mxu1  ;;  %3411 = vmatprep.subr.bf16.mxu0 %v3382_v23 }
 0x567   :  { %v1675_v8 = vpop.f32.mrb[31].mxu1  ;;  %3413 = vmatpush3.bf16.msra.mxu0 %v3382_v23 }
 0x568   :  { %v3385_v10 = vpack.c.bf16 %v3093_v17, %v1675_v8  ;;  %3117 = vmatprep.mubr.f32.mxu0 %v1675_v8 }
 0x569   :  { %3118 = vmatmul.mubr.f32.gmra.mrb[60].mxu0 %v3093_v17 }
 0x56a   :  { %v3096_v3 = vpop.f32.mrb[32].mxu1  ;;  %3377 = vmatpush3.bf16.xpose.msra.mxu1 %v3376_v49  ;;  %3415 = vmatprep.subr.bf16.mxu0 %v3385_v10 }
 0x56b   :  { %v1685_v42 = vpop.f32.mrb[33].mxu1  ;;  %3417 = vmatpush3.bf16.msra.mxu0 %v3385_v10  ;;  %3378 = vmatprep.subr.bf16.mxu1 %v4980_v14 }
 0x56c   :  { %v3388_v45 = vpack.c.bf16 %v3096_v3, %v1685_v42  ;;  %3120 = vmatprep.mubr.f32.mxu0 %v1685_v42 }
 0x56d   :  { %3121 = vmatmul.mubr.f32.gmra.mrb[62].mxu0 %v3096_v3 }
 0x56e   :  { %3419 = vmatprep.subr.bf16.mxu0 %v3388_v45 }
 0x56f   :  { %3421 = vmatpush3.bf16.msra.mxu0 %v3388_v45 }
 0x572   :  { %3380 = vmatpush3.bf16.xpose.msra.mxu1 %v3379_v61 }
 0x573   :  { %3381 = vmatprep.subr.bf16.mxu1 %v4980_v14 }
 0x57a   :  { %3383 = vmatpush3.bf16.xpose.msra.mxu1 %v3382_v23 }
 0x57b   :  { %3384 = vmatprep.subr.bf16.mxu1 %v4980_v14 }
 0x582   :  { %3386 = vmatpush3.bf16.xpose.msra.mxu1 %v3385_v10 }
 0x583   :  { %3387 = vmatprep.subr.bf16.mxu1 %v4980_v14 }
 0x58a   :  { %3389 = vmatpush3.bf16.xpose.msra.mxu1 %v3388_v45 }
 0x591   :  { %3156 = vmatmul.mubr.f32.vlgmr.msra.gmra.mrb[34].mxu1 %v1840_v26  ;;  %v3736_v26 = vld [vmem:[#allocation2 + $0x20] sm:$0xff] }
 0x624   :  { %v3101_v50 = vpop.f32.mrb[48].mxu0 }
 0x625   :  { %1918 = vperm.xlu1 %3442, %v3101_v50   ;;  %v1761_v22 = vpop.f32.mrb[49].mxu0 }
 0x626   :  { %1913 = vperm.xlu0 %3441, %v1761_v22  }
 0x628   :  { %v3104_v19 = vpop.f32.mrb[50].mxu0 }
 0x629   :  { %1928 = vperm.xlu1 %3442, %v3104_v19   ;;  %v1771_v31 = vpop.f32.mrb[51].mxu0 }
 0x62c   :  { %v3107_v35 = vpop.f32.mrb[52].mxu0 }
 0x62d   :  { %1923 = vperm.xlu1 %3442, %v1771_v31   ;;  %v1781_v5 = vpop.f32.mrb[53].mxu0 }
 0x630   :  { %v3110_v43 = vpop.f32.mrb[54].mxu0 }
 0x631   :  { %1938 = vperm.xlu1 %3442, %v3107_v35   ;;  %v1791_v47 = vpop.f32.mrb[55].mxu0 }
 0x634   :  { %v3113_v14 = vpop.f32.mrb[56].mxu0 }
 0x635   :  { %1933 = vperm.xlu1 %3442, %v1781_v5   ;;  %1958 = vperm.xlu0 %3441, %v3113_v14   ;;  %v1801_v20 = vpop.f32.mrb[57].mxu0 }
 0x638   :  { %v3116_v56 = vpop.f32.mrb[58].mxu0 }
 0x639   :  { %1948 = vperm.xlu1 %3442, %v3110_v43   ;;  %1968 = vperm.xlu0 %3441, %v3116_v56   ;;  %v1811_v53 = vpop.f32.mrb[59].mxu0 }
 0x63c   :  { %v3119_v25 = vpop.f32.mrb[60].mxu0 }
 0x63d   :  { %1943 = vperm.xlu1 %3442, %v1791_v47   ;;  %1978 = vperm.xlu0 %3441, %v3119_v25   ;;  %v1821_v6 = vpop.f32.mrb[61].mxu0 }
 0x640   :  { %v3122_v30 = vpop.f32.mrb[62].mxu0 }
 0x641   :  { %1953 = vperm.xlu1 %3442, %v1801_v20   ;;  %1988 = vperm.xlu0 %3441, %v3122_v30   ;;  %v1831_v16 = vpop.f32.mrb[63].mxu0  ;;  %v3737_v20 = vld [vmem:[#allocation2 + $0x38] sm:$0xff] }
 0x645   :  { %1963 = vperm.xlu1 %3442, %v1811_v53  }
 0x649   :  { %1973 = vperm.xlu1 %3442, %v1821_v6  }
 0x64d   :  { %1983 = vperm.xlu1 %3442, %v1831_v16  }
 0x664   :  { %v1907_v27 = vpop.f32.mrb[34].mxu1 }
 0x665   :  { %v3157_v4 = vpop.f32.mrb[35].mxu1  ;;  %v4716_v59 = vrot.slane %v1907_v27, %v4986_v2  ;;  %v3738_v27 = vld [vmem:[#allocation2 + $0x48] sm:$0xff] }
 0x6a4   :  { %v1919_v46 = vpop.permute.xlu1 %1918 }
 0x6a5   :  { %v1996_v51 = vadd.f32 %v4716_v59, %v1919_v46  ;;  %v1914_v44 = vpop.permute.xlu0 %1913 }
 0x6a6   :  { %v1995_v40 = vadd.f32 %v4716_v59, %v1914_v44 }
 0x6a7   :  { %v2012_v7 = vmul.f32 0.2, %v1996_v51 }
 0x6a8   :  { %v2011_v62 = vmul.f32 0.2, %v1995_v40  ;;  %v1929_v33 = vpop.permute.xlu1 %1928 }
 0x6a9   :  { %v2028_v52 = vmax.f32 %v1996_v51, %v2012_v7  ;;  %v1998_v58 = vadd.f32 %v4716_v59, %v1929_v33  ;;  %v3739_v51 = vld [vmem:[#allocation2 + $0x30] sm:$0xff]  ;;  %v3740_v33 = vld [vmem:[#allocation2 + $0x58] sm:$0xff] }
 0x6aa   :  { %v2027_v15 = vmax.f32 %v1995_v40, %v2011_v62 }
 0x6ab   :  { %v2014_v13 = vmul.f32 0.2, %v1998_v58  ;;  %v4721_v54 = vadd.f32 %v3731_v12, %v2028_v52  ;;  %v3741_v12 = vld [vmem:[#allocation2 + $0x40] sm:$0xff] }
 0x6ac   :  { %v1924_v0 = vpop.permute.xlu1 %1923  ;;  %v4723_v36 = vadd.f32 %v3732_v29, %v2027_v15 }
 0x6ad   :  { %v2030_v28 = vmax.f32 %v1998_v58, %v2014_v13  ;;  %v1997_v55 = vadd.f32 %v4716_v59, %v1924_v0  ;;  %2061 = vmax.xlane.f32.xlu0 %v4721_v54 }
 0x6ae   :  { %2059 = vmax.xlane.f32.xlu1 %v4723_v36 }
 0x6af   :  { %v2013_v9 = vmul.f32 0.2, %v1997_v55  ;;  %v4728_v57 = vadd.f32 %v3733_v39, %v2030_v28 }
 0x6b0   :  { %v1939_v11 = vpop.permute.xlu1 %1938 }
 0x6b1   :  { %v2029_v21 = vmax.f32 %v1997_v55, %v2013_v9  ;;  %v2000_v37 = vadd.f32 %v4716_v59, %v1939_v11  ;;  %v3742_v11 = vld [vmem:[#allocation2 + $0x68] sm:$0xff] }
 0x6b2   :  { %2065 = vmax.xlane.f32.xlu1 %v4728_v57 }
 0x6b3   :  { %v2016_v18 = vmul.f32 0.2, %v2000_v37  ;;  %v4732_v32 = vadd.f32 %v3734_v38, %v2029_v21 }
 0x6b4   :  { %v1959_v41 = vpop.permute.xlu0 %1958  ;;  %v1934_v60 = vpop.permute.xlu1 %1933 }
 0x6b5   :  { %v2032_v49 = vmax.f32 %v2000_v37, %v2016_v18  ;;  %v1999_v48 = vadd.f32 %v4716_v59, %v1934_v60  ;;  %2063 = vmax.xlane.f32.xlu0 %v4732_v32  ;;  %v2004_v24 = vadd.f32 %v4716_v59, %v1959_v41  ;;  %v3743_v37 = vld [vmem:[#allocation2 + $0x50] sm:$0xff] }
 0x6b7   :  { %v2015_v61 = vmul.f32 0.2, %v1999_v48  ;;  %v4737_v63 = vadd.f32 %v3735_v34, %v2032_v49  ;;  %v2020_v3 = vmul.f32 0.2, %v2004_v24 }
 0x6b8   :  { %v1969_v23 = vpop.permute.xlu0 %1968  ;;  %v1949_v17 = vpop.permute.xlu1 %1948 }
 0x6b9   :  { %v2031_v8 = vmax.f32 %v1999_v48, %v2015_v61  ;;  %v2002_v10 = vadd.f32 %v4716_v59, %v1949_v17  ;;  %2069 = vmax.xlane.f32.xlu1 %v4737_v63  ;;  %v2006_v42 = vadd.f32 %v4716_v59, %v1969_v23  ;;  %v2036_v5 = vmax.f32 %v2004_v24, %v2020_v3  ;;  %v3744_v48 = vld [vmem:[#allocation2 + $0x78] sm:$0xff]  ;;  %v3745_v61 = vld [vmem:[#allocation2 + $0x60] sm:$0xff]  ;;  %v3746_v17 = vld [vmem:[#allocation2 + $0x70] sm:$0xff] }
 0x6bb   :  { %v2018_v45 = vmul.f32 0.2, %v2002_v10  ;;  %v4742_v50 = vadd.f32 %v3736_v26, %v2031_v8  ;;  %v2022_v43 = vmul.f32 0.2, %v2006_v42  ;;  %v4751_v4 = vadd.f32 %v3738_v27, %v2036_v5 }
 0x6bc   :  { %v1979_v22 = vpop.permute.xlu0 %1978  ;;  %v1944_v19 = vpop.permute.xlu1 %1943 }
 0x6bd   :  { %v2034_v31 = vmax.f32 %v2002_v10, %v2018_v45  ;;  %v2001_v35 = vadd.f32 %v4716_v59, %v1944_v19  ;;  %2067 = vmax.xlane.f32.xlu0 %v4742_v50  ;;  %v2008_v47 = vadd.f32 %v4716_v59, %v1979_v22  ;;  %v2038_v16 = vmax.f32 %v2006_v42, %v2022_v43 }
 0x6bf   :  { %v2017_v14 = vmul.f32 0.2, %v2001_v35  ;;  %v4747_v56 = vadd.f32 %v3737_v20, %v2034_v31  ;;  %v2024_v1 = vmul.f32 0.2, %v2008_v47  ;;  %v4759_v52 = vadd.f32 %v3740_v33, %v2038_v16 }
 0x6c0   :  { %v1989_v53 = vpop.permute.xlu0 %1988  ;;  %v1954_v25 = vpop.permute.xlu1 %1953 }
 0x6c1   :  { %v2033_v6 = vmax.f32 %v2001_v35, %v2017_v14  ;;  %v2003_v30 = vadd.f32 %v4716_v59, %v1954_v25  ;;  %2073 = vmax.xlane.f32.xlu1 %v4747_v56  ;;  %v2010_v2 = vadd.f32 %v4716_v59, %v1989_v53  ;;  %v2040_v58 = vmax.f32 %v2008_v47, %v2024_v1 }
 0x6c3   :  { %v2019_v46 = vmul.f32 0.2, %v2003_v30  ;;  %v4754_v44 = vadd.f32 %v3739_v51, %v2033_v6  ;;  %v2026_v15 = vmul.f32 0.2, %v2010_v2  ;;  %v4766_v21 = vadd.f32 %v3742_v11, %v2040_v58 }
 0x6c4   :  { %v1964_v40 = vpop.permute.xlu1 %1963 }
 0x6c5   :  { %v2035_v7 = vmax.f32 %v2003_v30, %v2019_v46  ;;  %v2005_v62 = vadd.f32 %v4716_v59, %v1964_v40  ;;  %2077 = vmax.xlane.f32.xlu1 %v4751_v4  ;;  %2071 = vmax.xlane.f32.xlu0 %v4754_v44  ;;  %v2042_v9 = vmax.f32 %v2010_v2, %v2026_v15 }
 0x6c7   :  { %v2021_v13 = vmul.f32 0.2, %v2005_v62  ;;  %v4761_v0 = vadd.f32 %v3741_v12, %v2035_v7  ;;  %v4773_v24 = vadd.f32 %v3744_v48, %v2042_v9 }
 0x6c8   :  { %v1974_v29 = vpop.permute.xlu1 %1973 }
 0x6c9   :  { %v2037_v28 = vmax.f32 %v2005_v62, %v2021_v13  ;;  %v2007_v55 = vadd.f32 %v4716_v59, %v1974_v29  ;;  %2081 = vmax.xlane.f32.xlu1 %v4759_v52  ;;  %2075 = vmax.xlane.f32.xlu0 %v4761_v0 }
 0x6cb   :  { %v2023_v39 = vmul.f32 0.2, %v2007_v55  ;;  %v4768_v18 = vadd.f32 %v3743_v37, %v2037_v28 }
 0x6cc   :  { %v1984_v38 = vpop.permute.xlu1 %1983 }
 0x6cd   :  { %v2039_v41 = vmax.f32 %v2007_v55, %v2023_v39  ;;  %v2009_v60 = vadd.f32 %v4716_v59, %v1984_v38  ;;  %2085 = vmax.xlane.f32.xlu1 %v4766_v21  ;;  %2079 = vmax.xlane.f32.xlu0 %v4768_v18 }
 0x6cf   :  { %v2025_v49 = vmul.f32 0.2, %v2009_v60  ;;  %v4775_v34 = vadd.f32 %v3745_v61, %v2039_v41 }
 0x6d1   :  { %v2041_v23 = vmax.f32 %v2009_v60, %v2025_v49  ;;  %2089 = vmax.xlane.f32.xlu1 %v4773_v24  ;;  %2083 = vmax.xlane.f32.xlu0 %v4775_v34 }
 0x6d3   :  { %v4779_v8 = vadd.f32 %v3746_v17, %v2041_v23 }
 0x6d5   :  { %2087 = vmax.xlane.f32.xlu0 %v4779_v8 }
 0x73a   :  { %v2062_v59 = vpop.xlane.xlu0 %2061 }
 0x73b   :  { %v2092_v10 = vsub.f32 %v4721_v54, %v2062_v59  ;;  %v2060_v3 = vpop.xlane.xlu1 %2059 }
 0x73c   :  { %v2091_v42 = vsub.f32 %v4723_v36, %v2060_v3 }
 0x73d   :  { %v2109_v45 = vmul.f32 1.442695, %v2092_v10 }
 0x73e   :  { %v2107_v26 = vmul.f32 1.442695, %v2091_v42 }
 0x73f   :  { %3603 = vpow2.f32 %v2109_v45  ;;  %v2066_v22 = vpop.xlane.xlu1 %2065 }
 0x740   :  { %3605 = vpow2.f32 %v2107_v26  ;;  %v2094_v19 = vsub.f32 %v4728_v57, %v2066_v22 }
 0x742   :  { %v2113_v31 = vmul.f32 1.442695, %v2094_v19  ;;  %v2064_v35 = vpop.xlane.xlu0 %2063 }
 0x743   :  { %v2093_v5 = vsub.f32 %v4732_v32, %v2064_v35 }
 0x744   :  { %3607 = vpow2.f32 %v2113_v31  ;;  %v4801_v31 = vld [vmem:[%s4971_s9] ss:$0 sm:$0xff]  ;;  %s3899_s9 = smov [#allocation11]  }
 0x745   :  { %v2111_v43 = vmul.f32 1.442695, %v2093_v5  ;;  %s2552_s14 = sshll.u32 %s3899_s9, 4  ;;  %s2553_s14 = int_to_ptr.vmem [resolvable:$true] %s2552_s14 }
 0x746   :  { %v2070_v47 = vpop.xlane.xlu1 %2069  ;;  %s3857_s19 = scalar_lea.vmem %s2553_s14, 2048  ;;  %p3862_p13 = scmp.lt.s32.totalorder %s2553_s14, %s2553_s14 }
 0x747   :  { %3609 = vpow2.f32 %v2111_v43  ;;  %v2096_v54 = vsub.f32 %v4737_v63, %v2070_v47  ;;  %p3858_p12 = scmp.ne.s32.totalorder %s2553_s14, %s3857_s19  ;;  %p3863_p0 = scmp.lt.s32.totalorder %s3857_s19, %s3857_s19 }
 0x749   :  { %v3604_v14 = vpop.eup %3603  ;;  %v2117_v20 = vmul.f32 1.442695, %v2096_v54  ;;  %p3864_p1 = por %p3863_p0, %p3862_p13 }
 0x74a   :  { %v3606_v36 = vpop.eup %3605  ;;  %v2068_v53 = vpop.xlane.xlu0 %2067  ;;  %2141 = vadd.xlane.f32.xlu1 %v3604_v14 }
 0x74b   :  { %3611 = vpow2.f32 %v2117_v20  ;;  %v2095_v25 = vsub.f32 %v4742_v50, %v2068_v53  ;;  %2139 = vadd.xlane.f32.xlu0 %v3606_v36  ;;  %3190 = vmatprep.mubr.f32.mxu0 %v3606_v36  ;;  %p3865_p2 = pnand %p3864_p1, %p3858_p12 }
 0x74c   :  { %3191 = vmatmul.mubr.f32.vlgmr.msra.gmra.mrb[64].mxu0 %v3604_v14 }
 0x74d   :  { %v2115_v57 = vmul.f32 1.442695, %v2095_v25 }
 0x74e   :  { %v3608_v6 = vpop.eup %3607  ;;  %v2074_v32 = vpop.xlane.xlu1 %2073 }
 0x74f   :  { %3613 = vpow2.f32 %v2115_v57  ;;  %v2098_v30 = vsub.f32 %v4747_v56, %v2074_v32  ;;  %2145 = vadd.xlane.f32.xlu1 %v3608_v6 }
 0x751   :  { %v3610_v16 = vpop.eup %3609  ;;  %v2121_v63 = vmul.f32 1.442695, %v2098_v30 }
 0x752   :  { %v2072_v27 = vpop.xlane.xlu0 %2071  ;;  %2143 = vadd.xlane.f32.xlu0 %v3610_v16  ;;  %3193 = vmatprep.mubr.f32.mxu0 %v3610_v16  ;;  %v2078_v1 = vpop.xlane.xlu1 %2077 }
 0x753   :  { %3615 = vpow2.f32 %v2121_v63  ;;  %v2097_v2 = vsub.f32 %v4754_v44, %v2072_v27  ;;  %v2100_v50 = vsub.f32 %v4751_v4, %v2078_v1  ;;  %3194 = vmatmul.mubr.f32.gmra.mrb[66].mxu0 %v3608_v6 }
 0x755   :  { %v3612_v46 = vpop.eup %3611  ;;  %v2119_v51 = vmul.f32 1.442695, %v2097_v2  ;;  %v2125_v40 = vmul.f32 1.442695, %v2100_v50 }
 0x756   :  { %v2076_v7 = vpop.xlane.xlu0 %2075  ;;  %2149 = vadd.xlane.f32.xlu1 %v3612_v46  ;;  %v2082_v62 = vpop.xlane.xlu1 %2081 }
 0x757   :  { %3617 = vpow2.f32 %v2119_v51  ;;  %v2099_v56 = vsub.f32 %v4761_v0, %v2076_v7  ;;  %v2102_v33 = vsub.f32 %v4759_v52, %v2082_v62 }
 0x758   :  { %3619 = vpow2.f32 %v2125_v40 }
 0x759   :  { %v3614_v58 = vpop.eup %3613  ;;  %v2123_v15 = vmul.f32 1.442695, %v2099_v56  ;;  %v2129_v13 = vmul.f32 1.442695, %v2102_v33 }
 0x75a   :  { %v2080_v12 = vpop.xlane.xlu0 %2079  ;;  %2147 = vadd.xlane.f32.xlu0 %v3614_v58  ;;  %3196 = vmatprep.mubr.f32.mxu0 %v3614_v58  ;;  %v2086_v4 = vpop.xlane.xlu1 %2085 }
 0x75b   :  { %3621 = vpow2.f32 %v2123_v15  ;;  %v2101_v44 = vsub.f32 %v4768_v18, %v2080_v12  ;;  %v2104_v29 = vsub.f32 %v4766_v21, %v2086_v4  ;;  %3197 = vmatmul.mubr.f32.gmra.mrb[68].mxu0 %v3612_v46 }
 0x75c   :  { %3623 = vpow2.f32 %v2129_v13 }
 0x75d   :  { %v3616_v28 = vpop.eup %3615  ;;  %v2127_v55 = vmul.f32 1.442695, %v2101_v44  ;;  %v2133_v0 = vmul.f32 1.442695, %v2104_v29 }
 0x75e   :  { %v2084_v9 = vpop.xlane.xlu0 %2083  ;;  %2153 = vadd.xlane.f32.xlu1 %v3616_v28  ;;  %v2090_v52 = vpop.xlane.xlu1 %2089 }
 0x75f   :  { %3625 = vpow2.f32 %v2127_v55  ;;  %v2103_v39 = vsub.f32 %v4775_v34, %v2084_v9  ;;  %v2106_v11 = vsub.f32 %v4773_v24, %v2090_v52 }
 0x760   :  { %3627 = vpow2.f32 %v2133_v0 }
 0x761   :  { %v3618_v37 = vpop.eup %3617  ;;  %v2131_v38 = vmul.f32 1.442695, %v2103_v39  ;;  %v2137_v41 = vmul.f32 1.442695, %v2106_v11 }
 0x762   :  { %v3620_v18 = vpop.eup %3619  ;;  %v2088_v60 = vpop.xlane.xlu0 %2087  ;;  %2151 = vadd.xlane.f32.xlu0 %v3618_v37  ;;  %3199 = vmatprep.mubr.f32.mxu0 %v3618_v37 }
 0x763   :  { %3629 = vpow2.f32 %v2131_v38  ;;  %v2105_v21 = vsub.f32 %v4779_v8, %v2088_v60  ;;  %2157 = vadd.xlane.f32.xlu1 %v3620_v18  ;;  %3200 = vmatmul.mubr.f32.gmra.mrb[70].mxu0 %v3616_v28 }
 0x764   :  { %3631 = vpow2.f32 %v2137_v41 }
 0x765   :  { %v3622_v49 = vpop.eup %3621  ;;  %v2135_v48 = vmul.f32 1.442695, %v2105_v21 }
 0x766   :  { %v3624_v61 = vpop.eup %3623  ;;  %2155 = vadd.xlane.f32.xlu0 %v3622_v49  ;;  %3202 = vmatprep.mubr.f32.mxu0 %v3622_v49 }
 0x767   :  { %3633 = vpow2.f32 %v2135_v48  ;;  %2161 = vadd.xlane.f32.xlu1 %v3624_v61  ;;  %3203 = vmatmul.mubr.f32.gmra.mrb[72].mxu0 %v3620_v18 }
 0x769   :  { %v3626_v24 = vpop.eup %3625 }
 0x76a   :  { %v3628_v34 = vpop.eup %3627  ;;  %2159 = vadd.xlane.f32.xlu0 %v3626_v24  ;;  %3205 = vmatprep.mubr.f32.mxu0 %v3626_v24 }
 0x76b   :  { %2165 = vadd.xlane.f32.xlu1 %v3628_v34  ;;  %3206 = vmatmul.mubr.f32.gmra.mrb[74].mxu0 %v3624_v61 }
 0x76d   :  { %v3630_v23 = vpop.eup %3629 }
 0x76e   :  { %v3632_v17 = vpop.eup %3631  ;;  %2163 = vadd.xlane.f32.xlu0 %v3630_v23  ;;  %3208 = vmatprep.mubr.f32.mxu0 %v3630_v23 }
 0x76f   :  { %2169 = vadd.xlane.f32.xlu1 %v3632_v17  ;;  %3209 = vmatmul.mubr.f32.gmra.mrb[76].mxu0 %v3628_v34 }
 0x771   :  { %v3634_v8 = vpop.eup %3633 }
 0x772   :  { %2167 = vadd.xlane.f32.xlu0 %v3634_v8  ;;  %3211 = vmatprep.mubr.f32.mxu0 %v3634_v8 }
 0x773   :  { %3212 = vmatmul.mubr.f32.gmra.mrb[78].mxu0 %v3632_v17 }
 0x7d7   :  { %v2142_v59 = vpop.xlane.xlu1 %2141 }
 0x7d8   :  { %v2140_v10 = vpop.xlane.xlu0 %2139  ;;  %3635 = vrcp.f32 %v2142_v59 }
 0x7d9   :  { %3637 = vrcp.f32 %v2140_v10 }
 0x7dc   :  { %v2146_v3 = vpop.xlane.xlu1 %2145 }
 0x7dd   :  { %3639 = vrcp.f32 %v2146_v3 }
 0x7df   :  { %v2144_v42 = vpop.xlane.xlu0 %2143 }
 0x7e0   :  { %3641 = vrcp.f32 %v2144_v42 }
 0x7e2   :  { %v3636_v22 = vpop.eup %3635 }
 0x7e3   :  { %v2150_v45 = vpop.xlane.xlu1 %2149  ;;  %v3638_v35 = vpop.eup %3637 }
 0x7e4   :  { %3643 = vrcp.f32 %v2150_v45 }
 0x7e7   :  { %v2148_v26 = vpop.xlane.xlu0 %2147  ;;  %v3640_v53 = vpop.eup %3639 }
 0x7e8   :  { %3645 = vrcp.f32 %v2148_v26 }
 0x7ea   :  { %v3642_v57 = vpop.eup %3641 }
 0x7eb   :  { %v2154_v47 = vpop.xlane.xlu1 %2153 }
 0x7ec   :  { %3647 = vrcp.f32 %v2154_v47 }
 0x7ee   :  { %v3644_v50 = vpop.eup %3643 }
 0x7ef   :  { %v2152_v14 = vpop.xlane.xlu0 %2151 }
 0x7f0   :  { %v2158_v6 = vpop.xlane.xlu1 %2157  ;;  %3649 = vrcp.f32 %v2152_v14 }
 0x7f1   :  { %3651 = vrcp.f32 %v2158_v6 }
 0x7f2   :  { %v3646_v40 = vpop.eup %3645 }
 0x7f3   :  { %v2156_v16 = vpop.xlane.xlu0 %2155 }
 0x7f4   :  { %v2162_v2 = vpop.xlane.xlu1 %2161  ;;  %3653 = vrcp.f32 %v2156_v16 }
 0x7f5   :  { %3655 = vrcp.f32 %v2162_v2 }
 0x7f6   :  { %v3648_v12 = vpop.eup %3647 }
 0x7f7   :  { %v2160_v46 = vpop.xlane.xlu0 %2159 }
 0x7f8   :  { %v2166_v15 = vpop.xlane.xlu1 %2165  ;;  %3657 = vrcp.f32 %v2160_v46 }
 0x7f9   :  { %3659 = vrcp.f32 %v2166_v15 }
 0x7fa   :  { %v3650_v44 = vpop.eup %3649 }
 0x7fb   :  { %v2164_v13 = vpop.xlane.xlu0 %2163  ;;  %v3652_v52 = vpop.eup %3651 }
 0x7fc   :  { %3661 = vrcp.f32 %v2164_v13  ;;  %v2170_v0 = vpop.xlane.xlu1 %2169 }
 0x7fd   :  { %3663 = vrcp.f32 %v2170_v0 }
 0x7fe   :  { %v3654_v38 = vpop.eup %3653 }
 0x7ff   :  { %v2168_v39 = vpop.xlane.xlu0 %2167  ;;  %v3656_v49 = vpop.eup %3655 }
 0x800   :  { %3665 = vrcp.f32 %v2168_v39 }
 0x802   :  { %v3658_v24 = vpop.eup %3657 }
 0x803   :  { %v3660_v59 = vpop.eup %3659 }
 0x806   :  { %v3662_v42 = vpop.eup %3661 }
 0x81f   :  { %v3192_v19 = vpop.f32.mrb[64].mxu0 }
 0x820   :  { %v2333_v5 = vmul.f32 %v3636_v22, %v3192_v19  ;;  %v2237_v43 = vpop.f32.mrb[65].mxu0 }
 0x821   :  { %v2332_v54 = vmul.f32 %v3638_v35, %v2237_v43  ;;  %v3664_v35 = vpop.eup %3663 }
 0x822   :  { %v4804_v20 = vadd.f32 %v4801_v31, %v2333_v5  ;;  %v3666_v47 = vpop.eup %3665 }
 0x823   :  { %v4807_v36 = vadd.f32 %v4801_v31, %v2332_v54 }
 0x824   :  { %2373 = vmax.xlane.f32.xlu1 %v4804_v20 }
 0x825   :  { %2371 = vmax.xlane.f32.xlu0 %v4807_v36 }
 0x826   :  { %v3195_v25 = vpop.f32.mrb[66].mxu0 }
 0x827   :  { %v2335_v32 = vmul.f32 %v3640_v53, %v3195_v25  ;;  %v2247_v30 = vpop.f32.mrb[67].mxu0 }
 0x828   :  { %v2334_v63 = vmul.f32 %v3642_v57, %v2247_v30 }
 0x829   :  { %v4812_v27 = vadd.f32 %v4801_v31, %v2335_v32 }
 0x82a   :  { %v4815_v1 = vadd.f32 %v4801_v31, %v2334_v63 }
 0x82b   :  { %2377 = vmax.xlane.f32.xlu1 %v4812_v27 }
 0x82c   :  { %2375 = vmax.xlane.f32.xlu0 %v4815_v1 }
 0x82e   :  { %v3198_v51 = vpop.f32.mrb[68].mxu0 }
 0x82f   :  { %v2337_v7 = vmul.f32 %v3644_v50, %v3198_v51  ;;  %v2257_v62 = vpop.f32.mrb[69].mxu0 }
 0x830   :  { %v2336_v56 = vmul.f32 %v3646_v40, %v2257_v62 }
 0x831   :  { %v4820_v33 = vadd.f32 %v4801_v31, %v2337_v7 }
 0x832   :  { %v4823_v58 = vadd.f32 %v4801_v31, %v2336_v56 }
 0x833   :  { %2381 = vmax.xlane.f32.xlu1 %v4820_v33 }
 0x834   :  { %2379 = vmax.xlane.f32.xlu0 %v4823_v58 }
 0x836   :  { %v3201_v4 = vpop.f32.mrb[70].mxu0 }
 0x837   :  { %v2339_v29 = vmul.f32 %v3648_v12, %v3201_v4  ;;  %v2267_v28 = vpop.f32.mrb[71].mxu0 }
 0x838   :  { %v2338_v55 = vmul.f32 %v3650_v44, %v2267_v28 }
 0x839   :  { %v4828_v9 = vadd.f32 %v4801_v31, %v2339_v29 }
 0x83a   :  { %v4831_v11 = vadd.f32 %v4801_v31, %v2338_v55  ;;  %v3204_v37 = vpop.f32.mrb[72].mxu0 }
 0x83b   :  { %v2341_v41 = vmul.f32 %v3652_v52, %v3204_v37  ;;  %v2277_v18 = vpop.f32.mrb[73].mxu0  ;;  %2385 = vmax.xlane.f32.xlu1 %v4828_v9 }
 0x83c   :  { %v2340_v60 = vmul.f32 %v3654_v38, %v2277_v18  ;;  %2383 = vmax.xlane.f32.xlu0 %v4831_v11 }
 0x83d   :  { %v4836_v21 = vadd.f32 %v4801_v31, %v2341_v41 }
 0x83e   :  { %v4839_v48 = vadd.f32 %v4801_v31, %v2340_v60  ;;  %v3207_v61 = vpop.f32.mrb[74].mxu0 }
 0x83f   :  { %v2343_v34 = vmul.f32 %v3656_v49, %v3207_v61  ;;  %v2287_v23 = vpop.f32.mrb[75].mxu0  ;;  %2389 = vmax.xlane.f32.xlu1 %v4836_v21 }
 0x840   :  { %v2342_v17 = vmul.f32 %v3658_v24, %v2287_v23  ;;  %2387 = vmax.xlane.f32.xlu0 %v4839_v48 }
 0x841   :  { %v4844_v8 = vadd.f32 %v4801_v31, %v2343_v34 }
 0x842   :  { %v4847_v10 = vadd.f32 %v4801_v31, %v2342_v17  ;;  %v3210_v3 = vpop.f32.mrb[76].mxu0 }
 0x843   :  { %v2345_v45 = vmul.f32 %v3660_v59, %v3210_v3  ;;  %v2297_v26 = vpop.f32.mrb[77].mxu0  ;;  %2393 = vmax.xlane.f32.xlu1 %v4844_v8 }
 0x844   :  { %v2344_v22 = vmul.f32 %v3662_v42, %v2297_v26  ;;  %2391 = vmax.xlane.f32.xlu0 %v4847_v10 }
 0x845   :  { %v4852_v19 = vadd.f32 %v4801_v31, %v2345_v45 }
 0x846   :  { %v4855_v5 = vadd.f32 %v4801_v31, %v2344_v22  ;;  %v3213_v43 = vpop.f32.mrb[78].mxu0 }
 0x847   :  { %v2347_v54 = vmul.f32 %v3664_v35, %v3213_v43  ;;  %v2307_v14 = vpop.f32.mrb[79].mxu0  ;;  %2397 = vmax.xlane.f32.xlu1 %v4852_v19 }
 0x848   :  { %v2346_v53 = vmul.f32 %v3666_v47, %v2307_v14  ;;  %2395 = vmax.xlane.f32.xlu0 %v4855_v5 }
 0x849   :  { %v4860_v25 = vadd.f32 %v4801_v31, %v2347_v54 }
 0x84a   :  { %v4863_v57 = vadd.f32 %v4801_v31, %v2346_v53 }
 0x84b   :  { %2401 = vmax.xlane.f32.xlu1 %v4860_v25 }
 0x84c   :  { %2399 = vmax.xlane.f32.xlu0 %v4863_v57 }
 0x8b1   :  { %v2374_v6 = vpop.xlane.xlu1 %2373 }
 0x8b2   :  { %v4868_v32 = vsub.f32 %v4804_v20, %v2374_v6  ;;  %v2372_v30 = vpop.xlane.xlu0 %2371 }
 0x8b3   :  { %v4871_v16 = vsub.f32 %v4807_v36, %v2372_v30 }
 0x8b4   :  { %v2421_v63 = vmul.f32 1.442695, %v4868_v32 }
 0x8b5   :  { %v2419_v2 = vmul.f32 1.442695, %v4871_v16 }
 0x8b6   :  { %3667 = vpow2.f32 %v2421_v63 }
 0x8b7   :  { %3669 = vpow2.f32 %v2419_v2 }
 0x8b8   :  { %v2378_v31 = vpop.xlane.xlu1 %2377 }
 0x8b9   :  { %v4876_v50 = vsub.f32 %v4812_v27, %v2378_v31  ;;  %v2376_v46 = vpop.xlane.xlu0 %2375 }
 0x8ba   :  { %v4879_v51 = vsub.f32 %v4815_v1, %v2376_v46 }
 0x8bb   :  { %v2425_v20 = vmul.f32 1.442695, %v4876_v50 }
 0x8bc   :  { %v2423_v40 = vmul.f32 1.442695, %v4879_v51 }
 0x8bd   :  { %3671 = vpow2.f32 %v2425_v20 }
 0x8be   :  { %3673 = vpow2.f32 %v2423_v40 }
 0x8c0   :  { %v3668_v36 = vpop.eup %3667  ;;  %v2382_v7 = vpop.xlane.xlu1 %2381 }
 0x8c1   :  { %v3670_v62 = vpop.eup %3669  ;;  %v4884_v56 = vsub.f32 %v4820_v33, %v2382_v7  ;;  %v2380_v15 = vpop.xlane.xlu0 %2379  ;;  %2453 = vadd.xlane.f32.xlu1 %v3668_v36 }
 0x8c2   :  { %v4887_v27 = vsub.f32 %v4823_v58, %v2380_v15  ;;  %2451 = vadd.xlane.f32.xlu0 %v3670_v62 }
 0x8c3   :  { %v2429_v1 = vmul.f32 1.442695, %v4884_v56 }
 0x8c4   :  { %v2427_v13 = vmul.f32 1.442695, %v4887_v27 }
 0x8c5   :  { %3675 = vpow2.f32 %v2429_v1 }
 0x8c6   :  { %3677 = vpow2.f32 %v2427_v13 }
 0x8c7   :  { %v3672_v12 = vpop.eup %3671 }
 0x8c8   :  { %v3674_v4 = vpop.eup %3673  ;;  %2457 = vadd.xlane.f32.xlu1 %v3672_v12  ;;  %v2386_v44 = vpop.xlane.xlu1 %2385 }
 0x8c9   :  { %v4892_v29 = vsub.f32 %v4828_v9, %v2386_v44  ;;  %v2384_v33 = vpop.xlane.xlu0 %2383  ;;  %2455 = vadd.xlane.f32.xlu0 %v3674_v4 }
 0x8ca   :  { %v4895_v28 = vsub.f32 %v4831_v11, %v2384_v33 }
 0x8cb   :  { %v2433_v58 = vmul.f32 1.442695, %v4892_v29 }
 0x8cc   :  { %v2431_v55 = vmul.f32 1.442695, %v4895_v28  ;;  %v2390_v0 = vpop.xlane.xlu1 %2389 }
 0x8cd   :  { %3679 = vpow2.f32 %v2433_v58  ;;  %v4900_v52 = vsub.f32 %v4836_v21, %v2390_v0  ;;  %v2388_v39 = vpop.xlane.xlu0 %2387 }
 0x8ce   :  { %3681 = vpow2.f32 %v2431_v55  ;;  %v4903_v37 = vsub.f32 %v4839_v48, %v2388_v39 }
 0x8cf   :  { %v3676_v9 = vpop.eup %3675  ;;  %v2437_v38 = vmul.f32 1.442695, %v4900_v52 }
 0x8d0   :  { %v3678_v41 = vpop.eup %3677  ;;  %v2435_v11 = vmul.f32 1.442695, %v4903_v37  ;;  %2461 = vadd.xlane.f32.xlu1 %v3676_v9  ;;  %v2394_v18 = vpop.xlane.xlu1 %2393 }
 0x8d1   :  { %3683 = vpow2.f32 %v2437_v38  ;;  %v4908_v60 = vsub.f32 %v4844_v8, %v2394_v18  ;;  %v2392_v49 = vpop.xlane.xlu0 %2391  ;;  %2459 = vadd.xlane.f32.xlu0 %v3678_v41 }
 0x8d2   :  { %3685 = vpow2.f32 %v2435_v11  ;;  %v4911_v21 = vsub.f32 %v4847_v10, %v2392_v49 }
 0x8d3   :  { %v2441_v48 = vmul.f32 1.442695, %v4908_v60 }
 0x8d4   :  { %v2439_v61 = vmul.f32 1.442695, %v4911_v21  ;;  %v2398_v24 = vpop.xlane.xlu1 %2397 }
 0x8d5   :  { %3687 = vpow2.f32 %v2441_v48  ;;  %v4916_v34 = vsub.f32 %v4852_v19, %v2398_v24  ;;  %v2396_v23 = vpop.xlane.xlu0 %2395 }
 0x8d6   :  { %3689 = vpow2.f32 %v2439_v61  ;;  %v4919_v17 = vsub.f32 %v4855_v5, %v2396_v23 }
 0x8d7   :  { %v3680_v8 = vpop.eup %3679  ;;  %v2445_v59 = vmul.f32 1.442695, %v4916_v34 }
 0x8d8   :  { %v3682_v3 = vpop.eup %3681  ;;  %v2443_v10 = vmul.f32 1.442695, %v4919_v17  ;;  %2465 = vadd.xlane.f32.xlu1 %v3680_v8  ;;  %v2402_v42 = vpop.xlane.xlu1 %2401 }
 0x8d9   :  { %3691 = vpow2.f32 %v2445_v59  ;;  %v4924_v45 = vsub.f32 %v4860_v25, %v2402_v42  ;;  %2463 = vadd.xlane.f32.xlu0 %v3682_v3  ;;  %v2400_v26 = vpop.xlane.xlu0 %2399 }
 0x8da   :  { %3693 = vpow2.f32 %v2443_v10  ;;  %v4927_v22 = vsub.f32 %v4863_v57, %v2400_v26 }
 0x8db   :  { %v3684_v19 = vpop.eup %3683  ;;  %v2449_v35 = vmul.f32 1.442695, %v4924_v45 }
 0x8dc   :  { %v3686_v5 = vpop.eup %3685  ;;  %v2447_v43 = vmul.f32 1.442695, %v4927_v22  ;;  %2469 = vadd.xlane.f32.xlu1 %v3684_v19 }
 0x8dd   :  { %3695 = vpow2.f32 %v2449_v35  ;;  %2467 = vadd.xlane.f32.xlu0 %v3686_v5 }
 0x8de   :  { %3697 = vpow2.f32 %v2447_v43 }
 0x8df   :  { %v3688_v47 = vpop.eup %3687 }
 0x8e0   :  { %v3690_v54 = vpop.eup %3689  ;;  %2473 = vadd.xlane.f32.xlu1 %v3688_v47 }
 0x8e1   :  { %2471 = vadd.xlane.f32.xlu0 %v3690_v54 }
 0x8e3   :  { %v3692_v14 = vpop.eup %3691 }
 0x8e4   :  { %v3694_v53 = vpop.eup %3693  ;;  %2477 = vadd.xlane.f32.xlu1 %v3692_v14 }
 0x8e5   :  { %2475 = vadd.xlane.f32.xlu0 %v3694_v53 }
 0x8e7   :  { %v3696_v25 = vpop.eup %3695 }
 0x8e8   :  { %v3698_v57 = vpop.eup %3697  ;;  %2481 = vadd.xlane.f32.xlu1 %v3696_v25 }
 0x8e9   :  { %2479 = vadd.xlane.f32.xlu0 %v3698_v57 }
 0x94e   :  { %v2454_v6 = vpop.xlane.xlu1 %2453 }
 0x94f   :  { %3699 = vlog2.f32 %v2454_v6  ;;  %v2452_v30 = vpop.xlane.xlu0 %2451 }
 0x950   :  { %3701 = vlog2.f32 %v2452_v30 }
 0x955   :  { %v2458_v63 = vpop.xlane.xlu1 %2457 }
 0x956   :  { %3703 = vlog2.f32 %v2458_v63  ;;  %v2456_v2 = vpop.xlane.xlu0 %2455 }
 0x957   :  { %3705 = vlog2.f32 %v2456_v2 }
 0x959   :  { %v3700_v31 = vpop.eup %3699 }
 0x95a   :  { %v3702_v46 = vpop.eup %3701  ;;  %v2486_v20 = vmul.f32 0.6931472, %v3700_v31 }
 0x95b   :  { %v2484_v40 = vmul.f32 0.6931472, %v3702_v46 }
 0x95c   :  { %v2516_v36 = vsub.f32 %v4868_v32, %v2486_v20 }
 0x95d   :  { %v2515_v7 = vsub.f32 %v4871_v16, %v2484_v40  ;;  %v2462_v62 = vpop.xlane.xlu1 %2461 }
 0x95e   :  { %2532 = vst [vmem:[#allocation11 + $0x8] sm:$0xff] %v2516_v36  ;;  %3707 = vlog2.f32 %v2462_v62  ;;  %v2460_v15 = vpop.xlane.xlu0 %2459 }
 0x95f   :  { %2531 = vst [vmem:[#allocation11] sm:$0xff] %v2515_v7  ;;  %3709 = vlog2.f32 %v2460_v15 }
 0x960   :  { %v3704_v1 = vpop.eup %3703 }
 0x961   :  { %v3706_v13 = vpop.eup %3705  ;;  %v2490_v12 = vmul.f32 0.6931472, %v3704_v1 }
 0x962   :  { %v2488_v4 = vmul.f32 0.6931472, %v3706_v13 }
 0x963   :  { %v2518_v44 = vsub.f32 %v4876_v50, %v2490_v12 }
 0x964   :  { %v2517_v33 = vsub.f32 %v4879_v51, %v2488_v4 }
 0x965   :  { %2534 = vst [vmem:[#allocation11 + $0x18] sm:$0xff] %v2518_v44  ;;  %v2466_v58 = vpop.xlane.xlu1 %2465 }
 0x966   :  { %2533 = vst [vmem:[#allocation11 + $0x10] sm:$0xff] %v2517_v33  ;;  %3711 = vlog2.f32 %v2466_v58  ;;  %v2464_v32 = vpop.xlane.xlu0 %2463 }
 0x967   :  { %3713 = vlog2.f32 %v2464_v32 }
 0x968   :  { %v3708_v16 = vpop.eup %3707 }
 0x969   :  { %v3710_v55 = vpop.eup %3709  ;;  %v2494_v0 = vmul.f32 0.6931472, %v3708_v16  ;;  %v2470_v39 = vpop.xlane.xlu1 %2469 }
 0x96a   :  { %v2492_v9 = vmul.f32 0.6931472, %v3710_v55  ;;  %3715 = vlog2.f32 %v2470_v39  ;;  %v2468_v38 = vpop.xlane.xlu0 %2467 }
 0x96b   :  { %v2520_v41 = vsub.f32 %v4884_v56, %v2494_v0  ;;  %3717 = vlog2.f32 %v2468_v38 }
 0x96c   :  { %v2519_v50 = vsub.f32 %v4887_v27, %v2492_v9 }
 0x96d   :  { %2536 = vst [vmem:[#allocation11 + $0x28] sm:$0xff] %v2520_v41  ;;  %v2474_v51 = vpop.xlane.xlu1 %2473 }
 0x96e   :  { %2535 = vst [vmem:[#allocation11 + $0x20] sm:$0xff] %v2519_v50  ;;  %3719 = vlog2.f32 %v2474_v51  ;;  %v2472_v11 = vpop.xlane.xlu0 %2471 }
 0x96f   :  { %3721 = vlog2.f32 %v2472_v11 }
 0x970   :  { %v3712_v18 = vpop.eup %3711 }
 0x971   :  { %v3714_v49 = vpop.eup %3713  ;;  %v2498_v48 = vmul.f32 0.6931472, %v3712_v18  ;;  %v2478_v61 = vpop.xlane.xlu1 %2477 }
 0x972   :  { %v2496_v24 = vmul.f32 0.6931472, %v3714_v49  ;;  %3723 = vlog2.f32 %v2478_v61  ;;  %v2476_v23 = vpop.xlane.xlu0 %2475 }
 0x973   :  { %v2522_v8 = vsub.f32 %v4892_v29, %v2498_v48  ;;  %3725 = vlog2.f32 %v2476_v23 }
 0x974   :  { %v3716_v56 = vpop.eup %3715  ;;  %v2521_v59 = vsub.f32 %v4895_v28, %v2496_v24 }
 0x975   :  { %v3718_v27 = vpop.eup %3717  ;;  %2538 = vst [vmem:[#allocation11 + $0x38] sm:$0xff] %v2522_v8  ;;  %v2502_v3 = vmul.f32 0.6931472, %v3716_v56  ;;  %v2482_v10 = vpop.xlane.xlu1 %2481 }
 0x976   :  { %2537 = vst [vmem:[#allocation11 + $0x30] sm:$0xff] %v2521_v59  ;;  %v2500_v42 = vmul.f32 0.6931472, %v3718_v27  ;;  %3727 = vlog2.f32 %v2482_v10  ;;  %v2480_v26 = vpop.xlane.xlu0 %2479 }
 0x977   :  { %v2524_v19 = vsub.f32 %v4900_v52, %v2502_v3  ;;  %3729 = vlog2.f32 %v2480_v26 }
 0x978   :  { %v3720_v35 = vpop.eup %3719  ;;  %v2523_v5 = vsub.f32 %v4903_v37, %v2500_v42 }
 0x979   :  { %v3722_v43 = vpop.eup %3721  ;;  %2540 = vst [vmem:[#allocation11 + $0x48] sm:$0xff] %v2524_v19  ;;  %v2506_v29 = vmul.f32 0.6931472, %v3720_v35 }
 0x97a   :  { %2539 = vst [vmem:[#allocation11 + $0x40] sm:$0xff] %v2523_v5  ;;  %v2504_v47 = vmul.f32 0.6931472, %v3722_v43 }
 0x97b   :  { %v2526_v28 = vsub.f32 %v4908_v60, %v2506_v29 }
 0x97c   :  { %v3724_v54 = vpop.eup %3723  ;;  %v2525_v14 = vsub.f32 %v4911_v21, %v2504_v47 }
 0x97d   :  { %v3726_v53 = vpop.eup %3725  ;;  %2542 = vst [vmem:[#allocation11 + $0x58] sm:$0xff] %v2526_v28  ;;  %v2510_v25 = vmul.f32 0.6931472, %v3724_v54 }
 0x97e   :  { %2541 = vst [vmem:[#allocation11 + $0x50] sm:$0xff] %v2525_v14  ;;  %v2508_v57 = vmul.f32 0.6931472, %v3726_v53 }
 0x97f   :  { %v2528_v52 = vsub.f32 %v4916_v34, %v2510_v25 }
 0x980   :  { %v3728_v6 = vpop.eup %3727  ;;  %v2527_v37 = vsub.f32 %v4919_v17, %v2508_v57 }
 0x981   :  { %v3730_v30 = vpop.eup %3729  ;;  %2544 = vst [vmem:[#allocation11 + $0x68] sm:$0xff] %v2528_v52  ;;  %v2514_v63 = vmul.f32 0.6931472, %v3728_v6 }
 0x982   :  { %2543 = vst [vmem:[#allocation11 + $0x60] sm:$0xff] %v2527_v37  ;;  %v2512_v60 = vmul.f32 0.6931472, %v3730_v30 }
 0x983   :  { %v2530_v2 = vsub.f32 %v4924_v45, %v2514_v63 }
 0x984   :  { %v2529_v21 = vsub.f32 %v4927_v22, %v2512_v60 }
 0x985   :  { %2546 = vst [vmem:[#allocation11 + $0x78] sm:$0xff] %v2530_v2 }
 0x986   :  { %2545 = vst [vmem:[#allocation11 + $0x70] sm:$0xff] %v2529_v21 }
 0x987   :  { %3868 = shalt.err (!%p3865_p2)
}
 0x988   :  { %s3869_s20 = scalar_lea.hbm %s4972_s10, 2048 }
 0x989   :  { %p3870_p3 = scmp.ne.s32.totalorder %s4972_s10, %s3869_s20  ;;  %p3873_p4 = scmp.lt.u32.totalorder %s3869_s20, %s4972_s10 }
 0x98b   :  { %p3875_p5 = pnand %p3873_p4, %p3870_p3 }
 0x98d   :  { %3878 = shalt.err (!%p3875_p5)
}
 0x98e   :  { %2558 = dma.vmem_to_hbm [thread:$0]  %s2553_s14, 2048, %s4972_s10, [#allocation4], %s3889_s25, %s3889_s25, %s3890_s26  }
 0x98f   :  { %3885 = dma.done.wait [#allocation4], 2048  }
 0x990   :  { %3886 = vsyncadd [#allocation4], 4294965248 }
 0x991   :  { %2562 = vsyncpa [#allocation3], 1 }
 0x992   :  { %2563 = vsyncpa [#allocation6], 1 }
 0x993   :  { %2564 = vsyncpa [#allocation9], 1 }
 0x994   :  { %2565 = vsyncpa [#allocation4], 1 }

</bundles_post_ra>
